<compile_context>
chip_gen: v6e
topology: v6e:2x2x1
jax: 0.10.0
libtpu: 0.0.40
codegen_flags: <defaults>
</compile_context>

<pallas_src>
import functools

import jax
import jax.numpy as jnp
from jax import lax
from jax.experimental import pallas as pl
from jax.experimental.pallas import tpu as pltpu


def _round_up(x, m):
    return ((x + m - 1) // m) * m


# --------------------------------------------------------------------------- #
# Kernel 1: LSTM recurrence (time-major, batch-flattened)
# --------------------------------------------------------------------------- #
def _lstm_kernel(x_ref, w_ih_ref, b_ref, w_hh_ref, hs_ref, xg_scr,
                 *, bp, t_steps, unroll):
    """x_ref:    (T*Bp, E)    bf16  time-major flattened inputs
       w_ih_ref: (E, 4Hp)     bf16  input->gates (transposed, gate-padded)
       b_ref:    (1, 4Hp)     f32   combined bias (b_ih + b_hh, gate-padded)
       w_hh_ref: (Hp, 4Hp)    bf16  hidden->gates (transposed, padded)
       hs_ref:   (T*Bp, Hp)   bf16  OUT: all hidden states (written per step)
       xg_scr:   (T*Bp, 4Hp)  f32/bf16  precomputed input projection
    """
    Hp = hs_ref.shape[1]

    # One big MXU call for the time-independent part; bias folded in here so
    # nothing is re-broadcast inside the loop.
    xg_scr[...] = (
        jnp.dot(x_ref[...], w_ih_ref[...], preferred_element_type=jnp.float32)
        + b_ref[...]
    ).astype(xg_scr.dtype)

    h0 = jnp.zeros((bp, Hp), jnp.bfloat16)   # matmul operand dtype
    c0 = jnp.zeros((bp, Hp), jnp.float32)    # cell state kept in f32

    # TODO(synk): w_hh is loop-invariant; holding it in MXU weight staging via
    # pltpu.matmul_push_rhs / matmul_acc_lhs / matmul_pop would shave MXU fill
    # latency off the serial chain, but is kept as jnp.dot here for
    # portability/robustness across generations.
    def step(t, carry):
        h, c = carry
        row = pl.multiple_of(t * bp, bp)
        gates = xg_scr[pl.ds(row, bp), :].astype(jnp.float32) + jnp.dot(
            h, w_hh_ref[...], preferred_element_type=jnp.float32
        )                                                   # (Bp, 4Hp) f32
        # PyTorch LSTM gate order: i, f, g, o (each block lane-aligned: Hp%128==0)
        i_g = jax.nn.sigmoid(gates[:, 0 * Hp:1 * Hp])
        f_g = jax.nn.sigmoid(gates[:, 1 * Hp:2 * Hp])
        g_g = jnp.tanh(gates[:, 2 * Hp:3 * Hp])
        o_g = jax.nn.sigmoid(gates[:, 3 * Hp:4 * Hp])

        c_new = f_g * c + i_g * g_g
        h_new = (o_g * jnp.tanh(c_new)).astype(jnp.bfloat16)
        # Full-tile bf16 store (Bp == 16 sublanes, Hp multiple of 128 lanes).
        hs_ref[pl.ds(row, bp), :] = h_new
        return (h_new, c_new)

    lax.fori_loop(0, t_steps, step, (h0, c0), unroll=unroll)


# --------------------------------------------------------------------------- #
# Kernel 2: batched output projection, grid-tiled over vocab
# --------------------------------------------------------------------------- #
def _proj_kernel(hs_ref, w_out_ref, b_out_ref, out_ref):
    """hs_ref:    (T*Bp, Hp)  bf16
       w_out_ref: (Hp, tv)    bf16
       b_out_ref: (1, tv)     f32
       out_ref:   (T*Bp, tv)  f32
    """
    out_ref[...] = (
        jnp.dot(hs_ref[...], w_out_ref[...], preferred_element_type=jnp.float32)
        + b_out_ref[...]
    ).astype(out_ref.dtype)


# --------------------------------------------------------------------------- #
# Parameters
# --------------------------------------------------------------------------- #
def init_params(key, embed_size, hidden_size, vocab_size):
    """Deterministic synthetic parameters with PyTorch-equivalent shapes."""
    ks = jax.random.split(key, 7)
    s = 0.05
    return {
        "embed": jax.random.normal(ks[0], (vocab_size, embed_size), jnp.float32) * s,
        "w_ih": jax.random.normal(ks[1], (4 * hidden_size, embed_size), jnp.float32) * s,
        "w_hh": jax.random.normal(ks[2], (4 * hidden_size, hidden_size), jnp.float32) * s,
        "b_ih": jax.random.normal(ks[3], (4 * hidden_size,), jnp.float32) * s,
        "b_hh": jax.random.normal(ks[4], (4 * hidden_size,), jnp.float32) * s,
        "w_lin": jax.random.normal(ks[5], (vocab_size, hidden_size), jnp.float32) * s,
        "b_lin": jax.random.normal(ks[6], (vocab_size,), jnp.float32) * s,
    }


def _pad_gate_cols(w, H, Hp):
    """(rows, 4H) -> (rows, 4Hp): pad each i/f/g/o block from H to Hp columns."""
    blocks = [w[:, g * H:(g + 1) * H] for g in range(4)]
    blocks = [jnp.pad(b, ((0, 0), (0, Hp - H))) for b in blocks]
    return jnp.concatenate(blocks, axis=-1)


def prepare_params(raw):
    """Convert PyTorch-layout params into padded / transposed kernel layout.

    Padded hidden units have zero weights and zero bias, so their c/h state
    stays exactly 0 and they never influence the real outputs.
    """
    V, E = raw["embed"].shape
    H = raw["w_hh"].shape[1]
    Hp = _round_up(H, 128)          # lane-aligned gate slices
    Vp = _round_up(V, 128)          # lane-dense projection output

    w_ih = _pad_gate_cols(jnp.transpose(raw["w_ih"]), H, Hp)               # (E, 4Hp)
    w_hh = jnp.pad(jnp.transpose(raw["w_hh"]), ((0, Hp - H), (0, 0)))      # (Hp, 4H)
    w_hh = _pad_gate_cols(w_hh, H, Hp)                                     # (Hp, 4Hp)
    b = _pad_gate_cols((raw["b_ih"] + raw["b_hh"])[None, :], H, Hp)        # (1, 4Hp)
    w_out = jnp.pad(jnp.transpose(raw["w_lin"]),
                    ((0, Hp - H), (0, Vp - V)))                            # (Hp, Vp)
    b_out = jnp.pad(raw["b_lin"][None, :], ((0, 0), (0, Vp - V)))          # (1, Vp)

    return {
        "embed": raw["embed"],                       # (V, E)  f32 lookup table
        "w_ih": w_ih.astype(jnp.bfloat16),
        "w_hh": w_hh.astype(jnp.bfloat16),
        "b": b.astype(jnp.float32),
        "w_out": w_out.astype(jnp.bfloat16),
        "b_out": b_out.astype(jnp.float32),
        "dims": (H, Hp, V, Vp),
    }


def _pick_vocab_tile(TB, Hp, Vp, budget_bytes=40 << 20):
    """Largest lane-dense vocab tile that fits a v7x-safe VMEM budget and,
    whenever possible, leaves >= 2 grid tiles for the parallel axis."""
    candidates = [tv for tv in range(128, Vp + 1, 128) if Vp % tv == 0]

    def fits(tv):
        # resident hs block + double-buffered w_out/b_out/out tiles
        return (TB * Hp * 2 + 2 * (Hp * tv * 2 + tv * 4 + TB * tv * 4)) <= budget_bytes

    fitting = [tv for tv in candidates if fits(tv)]
    if not fitting:
        return 128
    multi_tile = [tv for tv in fitting if Vp // tv >= 2]
    return max(multi_tile) if multi_tile else max(fitting)


# --------------------------------------------------------------------------- #
# Forward pass (matches DecoderRNN.forward)
# --------------------------------------------------------------------------- #
def decoder_rnn_forward(params, features, captions, object_vec=None):
    """features: (B, E) f32, captions: (B, S) int32 -> (B, S, V) f32 logits."""
    # --- glue (plain JAX): embedding lookup + feature concat -----------------
    emb = params["embed"][captions[:, :-1]]                       # (B, S-1, E)
    if object_vec is not None and object_vec.shape[-1] == features.shape[-1]:
        features = features + object_vec
    inputs = jnp.concatenate([features[:, None, :], emb], axis=1)  # (B, T, E)

    B, T, E = inputs.shape
    H, Hp, V, Vp = params["dims"]
    Bp = _round_up(B, 16)                      # full bf16 sublane tile
    TB = T * Bp

    x = jnp.pad(inputs, ((0, Bp - B), (0, 0), (0, 0)))             # (Bp, T, E)
    x = jnp.transpose(x, (1, 0, 2)).reshape(TB, E)                 # time-major flat
    x = x.astype(jnp.bfloat16)

    vmem = pl.BlockSpec(memory_space=pltpu.MemorySpace.VMEM)

    # --- kernel 1: LSTM recurrence -> all hidden states -----------------------
    # xg scratch drops to bf16 once it would dominate the VMEM budget.
    xg_dtype = jnp.float32 if TB * 4 * Hp * 4 <= (16 << 20) else jnp.bfloat16
    xg_bytes = TB * 4 * Hp * jnp.dtype(xg_dtype).itemsize
    lstm_footprint = (TB * E * 2 + E * 4 * Hp * 2 + 4 * Hp * 4
                      + Hp * 4 * Hp * 2 + TB * Hp * 2 + xg_bytes)
    lstm_vmem_limit = min(int(lstm_footprint * 1.5) + (4 << 20), 64 << 20)

    lstm_cost = pl.CostEstimate(
        flops=2 * TB * (E + Hp) * 4 * Hp,
        transcendentals=5 * TB * Hp,
        bytes_accessed=lstm_footprint + 2 * xg_bytes + TB * Hp * 4,
    )
    hs = pl.pallas_call(
        functools.partial(_lstm_kernel, bp=Bp, t_steps=T, unroll=min(T, 8)),
        out_shape=jax.ShapeDtypeStruct((TB, Hp), jnp.bfloat16),
        in_specs=[vmem] * 4,
        out_specs=vmem,
        scratch_shapes=[
            pltpu.VMEM((TB, 4 * Hp), xg_dtype),   # precomputed x @ w_ih + b
        ],
        compiler_params=pltpu.CompilerParams(vmem_limit_bytes=lstm_vmem_limit),
        cost_estimate=lstm_cost,
    )(x, params["w_ih"], params["b"], params["w_hh"])

    # --- kernel 2: vocab projection, tiled over V (parallel grid axis) --------
    tv = _pick_vocab_tile(TB, Hp, Vp)
    proj_footprint = TB * Hp * 2 + 2 * (Hp * tv * 2 + tv * 4 + TB * tv * 4)
    proj_vmem_limit = min(int(proj_footprint * 1.5) + (4 << 20), 64 << 20)
    proj_cost = pl.CostEstimate(
        flops=2 * TB * Hp * Vp,
        transcendentals=0,
        bytes_accessed=TB * Hp * 2 + Hp * Vp * 2 + Vp * 4 + TB * Vp * 4,
    )
    # NOTE: output stays f32 for parity with the PyTorch module; switching
    # out_shape to bf16 halves the HBM writeback if the consumer tolerates it.
    out_flat = pl.pallas_call(
        _proj_kernel,
        out_shape=jax.ShapeDtypeStruct((TB, Vp), jnp.float32),
        grid=(Vp // tv,),
        in_specs=[
            pl.BlockSpec((TB, Hp), lambda j: (0, 0)),
            pl.BlockSpec((Hp, tv), lambda j: (0, j)),
            pl.BlockSpec((1, tv), lambda j: (0, j)),
        ],
        out_specs=pl.BlockSpec((TB, tv), lambda j: (0, j)),
        compiler_params=pltpu.CompilerParams(
            dimension_semantics=("parallel",),
            vmem_limit_bytes=proj_vmem_limit),
        cost_estimate=proj_cost,
    )(hs, params["w_out"], params["b_out"])

    # unpad: (T*Bp, Vp) -> (T, Bp, Vp) -> keep real batch/vocab -> batch-first
    out = out_flat.reshape(T, Bp, Vp)[:, :B, :V]
    return jnp.transpose(out, (1, 0, 2))                           # (B, T, V)


# --------------------------------------------------------------------------- #
# Pure-JAX reference (f32) for a correctness sanity check
# --------------------------------------------------------------------------- #
def _reference_forward(raw, features, captions, object_vec=None):
    emb = raw["embed"][captions[:, :-1]]
    if object_vec is not None and object_vec.shape[-1] == features.shape[-1]:
        features = features + object_vec
    inputs = jnp.concatenate([features[:, None, :], emb], axis=1)
    B, T, _ = inputs.shape
    H = raw["w_hh"].shape[1]
    w_ih = jnp.transpose(raw["w_ih"])
    w_hh = jnp.transpose(raw["w_hh"])
    b = raw["b_ih"] + raw["b_hh"]
    h = jnp.zeros((B, H), jnp.float32)
    c = jnp.zeros((B, H), jnp.float32)
    outs = []
    for t in range(T):
        g = inputs[:, t] @ w_ih + h @ w_hh + b
        i = jax.nn.sigmoid(g[:, 0:H])
        f = jax.nn.sigmoid(g[:, H:2 * H])
        gg = jnp.tanh(g[:, 2 * H:3 * H])
        o = jax.nn.sigmoid(g[:, 3 * H:4 * H])
        c = f * c + i * gg
        h = o * jnp.tanh(c)
        outs.append(h @ jnp.transpose(raw["w_lin"]) + raw["b_lin"])
    return jnp.stack(outs, axis=1)


if __name__ == "__main__":
    embed_size, hidden_size, vocab_size = 32, 32, 128
    batch, seq = 2, 8

    key = jax.random.PRNGKey(0)
    k_par, k_feat, k_cap, k_obj = jax.random.split(key, 4)

    raw = init_params(k_par, embed_size, hidden_size, vocab_size)
    params = prepare_params(raw)
    features = jax.random.normal(k_feat, (batch, embed_size), jnp.float32)
    captions = jax.random.randint(k_cap, (batch, seq), 0, vocab_size, jnp.int32)
    object_vec = jax.random.normal(k_obj, (batch, embed_size), jnp.float32)

    out = decoder_rnn_forward(params, features, captions, object_vec)
    out = jax.block_until_ready(out)

    assert out.shape == (batch, seq, vocab_size), out.shape
    assert out.dtype == jnp.float32
    assert bool(jnp.all(jnp.isfinite(out)))

    # Loose tolerance: kernel uses bf16 MXU operands with f32 accumulation.
    ref = _reference_forward(raw, features, captions, object_vec)
    assert bool(jnp.allclose(out, ref, atol=5e-2, rtol=5e-2)), float(
        jnp.max(jnp.abs(out - ref)))

    # TODO(synk): nn.Dropout(0.5) is treated as eval-mode identity (inference
    # path); training-mode dropout would need pltpu.prng_* in the projection.
    print("KERNEL_OK")
</pallas_src>

<mosaic_0001>
module attributes {stable_mosaic.version = 11 : i64} {
  func.func @_lstm_kernel(%arg0: memref<128x32xbf16, #tpu.memory_space<vmem>>, %arg1: memref<32x512xbf16, #tpu.memory_space<vmem>>, %arg2: memref<1x512xf32, #tpu.memory_space<vmem>>, %arg3: memref<128x512xbf16, #tpu.memory_space<vmem>>, %arg4: memref<128x128xbf16, #tpu.memory_space<vmem>>, %arg5: memref<128x512xf32, #tpu.memory_space<vmem>>) attributes {dimension_semantics = [], scalar_prefetch = 0 : i64, scratch_operands = 1 : i64, tpu.core_type = #tpu.core_type<tc>} {
    %c0 = arith.constant 0 : index
    %c0_0 = arith.constant 0 : index
    %0 = vector.load %arg0[%c0, %c0_0] : memref<128x32xbf16, #tpu.memory_space<vmem>>, vector<128x32xbf16>
    %c0_1 = arith.constant 0 : index
    %c0_2 = arith.constant 0 : index
    %1 = vector.load %arg1[%c0_1, %c0_2] : memref<32x512xbf16, #tpu.memory_space<vmem>>, vector<32x512xbf16>
    %cst = arith.constant dense<0.000000e+00> : vector<128x512xf32>
    %2 = tpu.matmul %0, %1, %cst {dimension_numbers = #tpu.dot_dimension_numbers<[1], [0], [0], [1], [0, 0, 1, 1], [], []>} : vector<128x32xbf16>, vector<32x512xbf16>, vector<128x512xf32> -> vector<128x512xf32>
    %c0_3 = arith.constant 0 : index
    %c0_4 = arith.constant 0 : index
    %3 = vector.load %arg2[%c0_3, %c0_4] : memref<1x512xf32, #tpu.memory_space<vmem>>, vector<1x512xf32>
    %4 = vector.broadcast %3 : vector<1x512xf32> to vector<128x512xf32>
    %5 = arith.addf %2, %4 : vector<128x512xf32>
    %c0_5 = arith.constant 0 : index
    %c0_6 = arith.constant 0 : index
    %6 = vector.load %arg5[%c0_5, %c0_6] : memref<128x512xf32, #tpu.memory_space<vmem>>, vector<128x512xf32>
    tpu.vector_store %arg5[%c0_5, %c0_6], %5 {strides = array<i32>} : memref<128x512xf32, #tpu.memory_space<vmem>>, vector<128x512xf32>,
    %cst_7 = arith.constant 0.000000e+00 : bf16
    %7 = vector.broadcast %cst_7 : bf16 to vector<16x128xbf16>
    %cst_8 = arith.constant 0.000000e+00 : f32
    %8 = vector.broadcast %cst_8 : f32 to vector<16x128xf32>
    %c0_i32 = arith.constant 0 : i32
    %c16_i32 = arith.constant 16 : i32
    %9 = arith.muli %c0_i32, %c16_i32 : i32
    %10 = tpu.assume_multiple %9, 16 : i32
    %11 = arith.index_cast %10 : i32 to index
    %c0_9 = arith.constant 0 : index
    %12 = vector.load %arg5[%11, %c0_9] : memref<128x512xf32, #tpu.memory_space<vmem>>, vector<16x512xf32>
    %c0_10 = arith.constant 0 : index
    %c0_11 = arith.constant 0 : index
    %13 = vector.load %arg3[%c0_10, %c0_11] : memref<128x512xbf16, #tpu.memory_space<vmem>>, vector<128x512xbf16>
    %cst_12 = arith.constant dense<0.000000e+00> : vector<16x512xf32>
    %14 = tpu.matmul %7, %13, %cst_12 {dimension_numbers = #tpu.dot_dimension_numbers<[1], [0], [0], [1], [0, 0, 1, 1], [], []>} : vector<16x128xbf16>, vector<128x512xbf16>, vector<16x512xf32> -> vector<16x512xf32>
    %15 = arith.addf %12, %14 : vector<16x512xf32>
    %16 = vector.extract_strided_slice %15 {offsets = [0, 0], sizes = [16, 128], strides = [1, 1]} : vector<16x512xf32> to vector<16x128xf32>
    %17 = arith.negf %16 : vector<16x128xf32>
    %18 = math.exp %17 : vector<16x128xf32>
    %cst_13 = arith.constant 1.000000e+00 : f32
    %19 = vector.broadcast %cst_13 : f32 to vector<16x128xf32>
    %20 = arith.addf %19, %18 : vector<16x128xf32>
    %21 = arith.divf %19, %20 : vector<16x128xf32>
    %22 = vector.extract_strided_slice %15 {offsets = [0, 128], sizes = [16, 128], strides = [1, 1]} : vector<16x512xf32> to vector<16x128xf32>
    %23 = arith.negf %22 : vector<16x128xf32>
    %24 = math.exp %23 : vector<16x128xf32>
    %cst_14 = arith.constant 1.000000e+00 : f32
    %25 = vector.broadcast %cst_14 : f32 to vector<16x128xf32>
    %26 = arith.addf %25, %24 : vector<16x128xf32>
    %27 = arith.divf %25, %26 : vector<16x128xf32>
    %28 = vector.extract_strided_slice %15 {offsets = [0, 256], sizes = [16, 128], strides = [1, 1]} : vector<16x512xf32> to vector<16x128xf32>
    %29 = math.tanh %28 : vector<16x128xf32>
    %30 = vector.extract_strided_slice %15 {offsets = [0, 384], sizes = [16, 128], strides = [1, 1]} : vector<16x512xf32> to vector<16x128xf32>
    %31 = arith.negf %30 : vector<16x128xf32>
    %32 = math.exp %31 : vector<16x128xf32>
    %cst_15 = arith.constant 1.000000e+00 : f32
    %33 = vector.broadcast %cst_15 : f32 to vector<16x128xf32>
    %34 = arith.addf %33, %32 : vector<16x128xf32>
    %35 = arith.divf %33, %34 : vector<16x128xf32>
    %36 = arith.mulf %27, %8 : vector<16x128xf32>
    %37 = arith.mulf %21, %29 : vector<16x128xf32>
    %38 = arith.addf %36, %37 : vector<16x128xf32>
    %39 = math.tanh %38 : vector<16x128xf32>
    %40 = arith.mulf %35, %39 : vector<16x128xf32>
    %41 = arith.truncf %40 : vector<16x128xf32> to vector<16x128xbf16>
    %42 = arith.index_cast %10 : i32 to index
    %c0_16 = arith.constant 0 : index
    %43 = vector.load %arg4[%42, %c0_16] : memref<128x128xbf16, #tpu.memory_space<vmem>>, vector<16x128xbf16>
    tpu.vector_store %arg4[%42, %c0_16], %41 {strides = array<i32>} : memref<128x128xbf16, #tpu.memory_space<vmem>>, vector<16x128xbf16>,
    %c1_i32 = arith.constant 1 : i32
    %c16_i32_17 = arith.constant 16 : i32
    %44 = arith.muli %c1_i32, %c16_i32_17 : i32
    %45 = tpu.assume_multiple %44, 16 : i32
    %46 = arith.index_cast %45 : i32 to index
    %c0_18 = arith.constant 0 : index
    %47 = vector.load %arg5[%46, %c0_18] : memref<128x512xf32, #tpu.memory_space<vmem>>, vector<16x512xf32>
    %c0_19 = arith.constant 0 : index
    %c0_20 = arith.constant 0 : index
    %48 = vector.load %arg3[%c0_19, %c0_20] : memref<128x512xbf16, #tpu.memory_space<vmem>>, vector<128x512xbf16>
    %cst_21 = arith.constant dense<0.000000e+00> : vector<16x512xf32>
    %49 = tpu.matmul %41, %48, %cst_21 {dimension_numbers = #tpu.dot_dimension_numbers<[1], [0], [0], [1], [0, 0, 1, 1], [], []>} : vector<16x128xbf16>, vector<128x512xbf16>, vector<16x512xf32> -> vector<16x512xf32>
    %50 = arith.addf %47, %49 : vector<16x512xf32>
    %51 = vector.extract_strided_slice %50 {offsets = [0, 0], sizes = [16, 128], strides = [1, 1]} : vector<16x512xf32> to vector<16x128xf32>
    %52 = arith.negf %51 : vector<16x128xf32>
    %53 = math.exp %52 : vector<16x128xf32>
    %cst_22 = arith.constant 1.000000e+00 : f32
    %54 = vector.broadcast %cst_22 : f32 to vector<16x128xf32>
    %55 = arith.addf %54, %53 : vector<16x128xf32>
    %56 = arith.divf %54, %55 : vector<16x128xf32>
    %57 = vector.extract_strided_slice %50 {offsets = [0, 128], sizes = [16, 128], strides = [1, 1]} : vector<16x512xf32> to vector<16x128xf32>
    %58 = arith.negf %57 : vector<16x128xf32>
    %59 = math.exp %58 : vector<16x128xf32>
    %cst_23 = arith.constant 1.000000e+00 : f32
    %60 = vector.broadcast %cst_23 : f32 to vector<16x128xf32>
    %61 = arith.addf %60, %59 : vector<16x128xf32>
    %62 = arith.divf %60, %61 : vector<16x128xf32>
    %63 = vector.extract_strided_slice %50 {offsets = [0, 256], sizes = [16, 128], strides = [1, 1]} : vector<16x512xf32> to vector<16x128xf32>
    %64 = math.tanh %63 : vector<16x128xf32>
    %65 = vector.extract_strided_slice %50 {offsets = [0, 384], sizes = [16, 128], strides = [1, 1]} : vector<16x512xf32> to vector<16x128xf32>
    %66 = arith.negf %65 : vector<16x128xf32>
    %67 = math.exp %66 : vector<16x128xf32>
    %cst_24 = arith.constant 1.000000e+00 : f32
    %68 = vector.broadcast %cst_24 : f32 to vector<16x128xf32>
    %69 = arith.addf %68, %67 : vector<16x128xf32>
    %70 = arith.divf %68, %69 : vector<16x128xf32>
    %71 = arith.mulf %62, %38 : vector<16x128xf32>
    %72 = arith.mulf %56, %64 : vector<16x128xf32>
    %73 = arith.addf %71, %72 : vector<16x128xf32>
    %74 = math.tanh %73 : vector<16x128xf32>
    %75 = arith.mulf %70, %74 : vector<16x128xf32>
    %76 = arith.truncf %75 : vector<16x128xf32> to vector<16x128xbf16>
    %77 = arith.index_cast %45 : i32 to index
    %c0_25 = arith.constant 0 : index
    %78 = vector.load %arg4[%77, %c0_25] : memref<128x128xbf16, #tpu.memory_space<vmem>>, vector<16x128xbf16>
    tpu.vector_store %arg4[%77, %c0_25], %76 {strides = array<i32>} : memref<128x128xbf16, #tpu.memory_space<vmem>>, vector<16x128xbf16>,
    %c2_i32 = arith.constant 2 : i32
    %c16_i32_26 = arith.constant 16 : i32
    %79 = arith.muli %c2_i32, %c16_i32_26 : i32
    %80 = tpu.assume_multiple %79, 16 : i32
    %81 = arith.index_cast %80 : i32 to index
    %c0_27 = arith.constant 0 : index
    %82 = vector.load %arg5[%81, %c0_27] : memref<128x512xf32, #tpu.memory_space<vmem>>, vector<16x512xf32>
    %c0_28 = arith.constant 0 : index
    %c0_29 = arith.constant 0 : index
    %83 = vector.load %arg3[%c0_28, %c0_29] : memref<128x512xbf16, #tpu.memory_space<vmem>>, vector<128x512xbf16>
    %cst_30 = arith.constant dense<0.000000e+00> : vector<16x512xf32>
    %84 = tpu.matmul %76, %83, %cst_30 {dimension_numbers = #tpu.dot_dimension_numbers<[1], [0], [0], [1], [0, 0, 1, 1], [], []>} : vector<16x128xbf16>, vector<128x512xbf16>, vector<16x512xf32> -> vector<16x512xf32>
    %85 = arith.addf %82, %84 : vector<16x512xf32>
    %86 = vector.extract_strided_slice %85 {offsets = [0, 0], sizes = [16, 128], strides = [1, 1]} : vector<16x512xf32> to vector<16x128xf32>
    %87 = arith.negf %86 : vector<16x128xf32>
    %88 = math.exp %87 : vector<16x128xf32>
    %cst_31 = arith.constant 1.000000e+00 : f32
    %89 = vector.broadcast %cst_31 : f32 to vector<16x128xf32>
    %90 = arith.addf %89, %88 : vector<16x128xf32>
    %91 = arith.divf %89, %90 : vector<16x128xf32>
    %92 = vector.extract_strided_slice %85 {offsets = [0, 128], sizes = [16, 128], strides = [1, 1]} : vector<16x512xf32> to vector<16x128xf32>
    %93 = arith.negf %92 : vector<16x128xf32>
    %94 = math.exp %93 : vector<16x128xf32>
    %cst_32 = arith.constant 1.000000e+00 : f32
    %95 = vector.broadcast %cst_32 : f32 to vector<16x128xf32>
    %96 = arith.addf %95, %94 : vector<16x128xf32>
    %97 = arith.divf %95, %96 : vector<16x128xf32>
    %98 = vector.extract_strided_slice %85 {offsets = [0, 256], sizes = [16, 128], strides = [1, 1]} : vector<16x512xf32> to vector<16x128xf32>
    %99 = math.tanh %98 : vector<16x128xf32>
    %100 = vector.extract_strided_slice %85 {offsets = [0, 384], sizes = [16, 128], strides = [1, 1]} : vector<16x512xf32> to vector<16x128xf32>
    %101 = arith.negf %100 : vector<16x128xf32>
    %102 = math.exp %101 : vector<16x128xf32>
    %cst_33 = arith.constant 1.000000e+00 : f32
    %103 = vector.broadcast %cst_33 : f32 to vector<16x128xf32>
    %104 = arith.addf %103, %102 : vector<16x128xf32>
    %105 = arith.divf %103, %104 : vector<16x128xf32>
    %106 = arith.mulf %97, %73 : vector<16x128xf32>
    %107 = arith.mulf %91, %99 : vector<16x128xf32>
    %108 = arith.addf %106, %107 : vector<16x128xf32>
    %109 = math.tanh %108 : vector<16x128xf32>
    %110 = arith.mulf %105, %109 : vector<16x128xf32>
    %111 = arith.truncf %110 : vector<16x128xf32> to vector<16x128xbf16>
    %112 = arith.index_cast %80 : i32 to index
    %c0_34 = arith.constant 0 : index
    %113 = vector.load %arg4[%112, %c0_34] : memref<128x128xbf16, #tpu.memory_space<vmem>>, vector<16x128xbf16>
    tpu.vector_store %arg4[%112, %c0_34], %111 {strides = array<i32>} : memref<128x128xbf16, #tpu.memory_space<vmem>>, vector<16x128xbf16>,
    %c3_i32 = arith.constant 3 : i32
    %c16_i32_35 = arith.constant 16 : i32
    %114 = arith.muli %c3_i32, %c16_i32_35 : i32
    %115 = tpu.assume_multiple %114, 16 : i32
    %116 = arith.index_cast %115 : i32 to index
    %c0_36 = arith.constant 0 : index
    %117 = vector.load %arg5[%116, %c0_36] : memref<128x512xf32, #tpu.memory_space<vmem>>, vector<16x512xf32>
    %c0_37 = arith.constant 0 : index
    %c0_38 = arith.constant 0 : index
    %118 = vector.load %arg3[%c0_37, %c0_38] : memref<128x512xbf16, #tpu.memory_space<vmem>>, vector<128x512xbf16>
    %cst_39 = arith.constant dense<0.000000e+00> : vector<16x512xf32>
    %119 = tpu.matmul %111, %118, %cst_39 {dimension_numbers = #tpu.dot_dimension_numbers<[1], [0], [0], [1], [0, 0, 1, 1], [], []>} : vector<16x128xbf16>, vector<128x512xbf16>, vector<16x512xf32> -> vector<16x512xf32>
    %120 = arith.addf %117, %119 : vector<16x512xf32>
    %121 = vector.extract_strided_slice %120 {offsets = [0, 0], sizes = [16, 128], strides = [1, 1]} : vector<16x512xf32> to vector<16x128xf32>
    %122 = arith.negf %121 : vector<16x128xf32>
    %123 = math.exp %122 : vector<16x128xf32>
    %cst_40 = arith.constant 1.000000e+00 : f32
    %124 = vector.broadcast %cst_40 : f32 to vector<16x128xf32>
    %125 = arith.addf %124, %123 : vector<16x128xf32>
    %126 = arith.divf %124, %125 : vector<16x128xf32>
    %127 = vector.extract_strided_slice %120 {offsets = [0, 128], sizes = [16, 128], strides = [1, 1]} : vector<16x512xf32> to vector<16x128xf32>
    %128 = arith.negf %127 : vector<16x128xf32>
    %129 = math.exp %128 : vector<16x128xf32>
    %cst_41 = arith.constant 1.000000e+00 : f32
    %130 = vector.broadcast %cst_41 : f32 to vector<16x128xf32>
    %131 = arith.addf %130, %129 : vector<16x128xf32>
    %132 = arith.divf %130, %131 : vector<16x128xf32>
    %133 = vector.extract_strided_slice %120 {offsets = [0, 256], sizes = [16, 128], strides = [1, 1]} : vector<16x512xf32> to vector<16x128xf32>
    %134 = math.tanh %133 : vector<16x128xf32>
    %135 = vector.extract_strided_slice %120 {offsets = [0, 384], sizes = [16, 128], strides = [1, 1]} : vector<16x512xf32> to vector<16x128xf32>
    %136 = arith.negf %135 : vector<16x128xf32>
    %137 = math.exp %136 : vector<16x128xf32>
    %cst_42 = arith.constant 1.000000e+00 : f32
    %138 = vector.broadcast %cst_42 : f32 to vector<16x128xf32>
    %139 = arith.addf %138, %137 : vector<16x128xf32>
    %140 = arith.divf %138, %139 : vector<16x128xf32>
    %141 = arith.mulf %132, %108 : vector<16x128xf32>
    %142 = arith.mulf %126, %134 : vector<16x128xf32>
    %143 = arith.addf %141, %142 : vector<16x128xf32>
    %144 = math.tanh %143 : vector<16x128xf32>
    %145 = arith.mulf %140, %144 : vector<16x128xf32>
    %146 = arith.truncf %145 : vector<16x128xf32> to vector<16x128xbf16>
    %147 = arith.index_cast %115 : i32 to index
    %c0_43 = arith.constant 0 : index
    %148 = vector.load %arg4[%147, %c0_43] : memref<128x128xbf16, #tpu.memory_space<vmem>>, vector<16x128xbf16>
    tpu.vector_store %arg4[%147, %c0_43], %146 {strides = array<i32>} : memref<128x128xbf16, #tpu.memory_space<vmem>>, vector<16x128xbf16>,
    %c4_i32 = arith.constant 4 : i32
    %c16_i32_44 = arith.constant 16 : i32
    %149 = arith.muli %c4_i32, %c16_i32_44 : i32
    %150 = tpu.assume_multiple %149, 16 : i32
    %151 = arith.index_cast %150 : i32 to index
    %c0_45 = arith.constant 0 : index
    %152 = vector.load %arg5[%151, %c0_45] : memref<128x512xf32, #tpu.memory_space<vmem>>, vector<16x512xf32>
    %c0_46 = arith.constant 0 : index
    %c0_47 = arith.constant 0 : index
    %153 = vector.load %arg3[%c0_46, %c0_47] : memref<128x512xbf16, #tpu.memory_space<vmem>>, vector<128x512xbf16>
    %cst_48 = arith.constant dense<0.000000e+00> : vector<16x512xf32>
    %154 = tpu.matmul %146, %153, %cst_48 {dimension_numbers = #tpu.dot_dimension_numbers<[1], [0], [0], [1], [0, 0, 1, 1], [], []>} : vector<16x128xbf16>, vector<128x512xbf16>, vector<16x512xf32> -> vector<16x512xf32>
    %155 = arith.addf %152, %154 : vector<16x512xf32>
    %156 = vector.extract_strided_slice %155 {offsets = [0, 0], sizes = [16, 128], strides = [1, 1]} : vector<16x512xf32> to vector<16x128xf32>
    %157 = arith.negf %156 : vector<16x128xf32>
    %158 = math.exp %157 : vector<16x128xf32>
    %cst_49 = arith.constant 1.000000e+00 : f32
    %159 = vector.broadcast %cst_49 : f32 to vector<16x128xf32>
    %160 = arith.addf %159, %158 : vector<16x128xf32>
    %161 = arith.divf %159, %160 : vector<16x128xf32>
    %162 = vector.extract_strided_slice %155 {offsets = [0, 128], sizes = [16, 128], strides = [1, 1]} : vector<16x512xf32> to vector<16x128xf32>
    %163 = arith.negf %162 : vector<16x128xf32>
    %164 = math.exp %163 : vector<16x128xf32>
    %cst_50 = arith.constant 1.000000e+00 : f32
    %165 = vector.broadcast %cst_50 : f32 to vector<16x128xf32>
    %166 = arith.addf %165, %164 : vector<16x128xf32>
    %167 = arith.divf %165, %166 : vector<16x128xf32>
    %168 = vector.extract_strided_slice %155 {offsets = [0, 256], sizes = [16, 128], strides = [1, 1]} : vector<16x512xf32> to vector<16x128xf32>
    %169 = math.tanh %168 : vector<16x128xf32>
    %170 = vector.extract_strided_slice %155 {offsets = [0, 384], sizes = [16, 128], strides = [1, 1]} : vector<16x512xf32> to vector<16x128xf32>
    %171 = arith.negf %170 : vector<16x128xf32>
    %172 = math.exp %171 : vector<16x128xf32>
    %cst_51 = arith.constant 1.000000e+00 : f32
    %173 = vector.broadcast %cst_51 : f32 to vector<16x128xf32>
    %174 = arith.addf %173, %172 : vector<16x128xf32>
    %175 = arith.divf %173, %174 : vector<16x128xf32>
    %176 = arith.mulf %167, %143 : vector<16x128xf32>
    %177 = arith.mulf %161, %169 : vector<16x128xf32>
    %178 = arith.addf %176, %177 : vector<16x128xf32>
    %179 = math.tanh %178 : vector<16x128xf32>
    %180 = arith.mulf %175, %179 : vector<16x128xf32>
    %181 = arith.truncf %180 : vector<16x128xf32> to vector<16x128xbf16>
    %182 = arith.index_cast %150 : i32 to index
    %c0_52 = arith.constant 0 : index
    %183 = vector.load %arg4[%182, %c0_52] : memref<128x128xbf16, #tpu.memory_space<vmem>>, vector<16x128xbf16>
    tpu.vector_store %arg4[%182, %c0_52], %181 {strides = array<i32>} : memref<128x128xbf16, #tpu.memory_space<vmem>>, vector<16x128xbf16>,
    %c5_i32 = arith.constant 5 : i32
    %c16_i32_53 = arith.constant 16 : i32
    %184 = arith.muli %c5_i32, %c16_i32_53 : i32
    %185 = tpu.assume_multiple %184, 16 : i32
    %186 = arith.index_cast %185 : i32 to index
    %c0_54 = arith.constant 0 : index
    %187 = vector.load %arg5[%186, %c0_54] : memref<128x512xf32, #tpu.memory_space<vmem>>, vector<16x512xf32>
    %c0_55 = arith.constant 0 : index
    %c0_56 = arith.constant 0 : index
    %188 = vector.load %arg3[%c0_55, %c0_56] : memref<128x512xbf16, #tpu.memory_space<vmem>>, vector<128x512xbf16>
    %cst_57 = arith.constant dense<0.000000e+00> : vector<16x512xf32>
    %189 = tpu.matmul %181, %188, %cst_57 {dimension_numbers = #tpu.dot_dimension_numbers<[1], [0], [0], [1], [0, 0, 1, 1], [], []>} : vector<16x128xbf16>, vector<128x512xbf16>, vector<16x512xf32> -> vector<16x512xf32>
    %190 = arith.addf %187, %189 : vector<16x512xf32>
    %191 = vector.extract_strided_slice %190 {offsets = [0, 0], sizes = [16, 128], strides = [1, 1]} : vector<16x512xf32> to vector<16x128xf32>
    %192 = arith.negf %191 : vector<16x128xf32>
    %193 = math.exp %192 : vector<16x128xf32>
    %cst_58 = arith.constant 1.000000e+00 : f32
    %194 = vector.broadcast %cst_58 : f32 to vector<16x128xf32>
    %195 = arith.addf %194, %193 : vector<16x128xf32>
    %196 = arith.divf %194, %195 : vector<16x128xf32>
    %197 = vector.extract_strided_slice %190 {offsets = [0, 128], sizes = [16, 128], strides = [1, 1]} : vector<16x512xf32> to vector<16x128xf32>
    %198 = arith.negf %197 : vector<16x128xf32>
    %199 = math.exp %198 : vector<16x128xf32>
    %cst_59 = arith.constant 1.000000e+00 : f32
    %200 = vector.broadcast %cst_59 : f32 to vector<16x128xf32>
    %201 = arith.addf %200, %199 : vector<16x128xf32>
    %202 = arith.divf %200, %201 : vector<16x128xf32>
    %203 = vector.extract_strided_slice %190 {offsets = [0, 256], sizes = [16, 128], strides = [1, 1]} : vector<16x512xf32> to vector<16x128xf32>
    %204 = math.tanh %203 : vector<16x128xf32>
    %205 = vector.extract_strided_slice %190 {offsets = [0, 384], sizes = [16, 128], strides = [1, 1]} : vector<16x512xf32> to vector<16x128xf32>
    %206 = arith.negf %205 : vector<16x128xf32>
    %207 = math.exp %206 : vector<16x128xf32>
    %cst_60 = arith.constant 1.000000e+00 : f32
    %208 = vector.broadcast %cst_60 : f32 to vector<16x128xf32>
    %209 = arith.addf %208, %207 : vector<16x128xf32>
    %210 = arith.divf %208, %209 : vector<16x128xf32>
    %211 = arith.mulf %202, %178 : vector<16x128xf32>
    %212 = arith.mulf %196, %204 : vector<16x128xf32>
    %213 = arith.addf %211, %212 : vector<16x128xf32>
    %214 = math.tanh %213 : vector<16x128xf32>
    %215 = arith.mulf %210, %214 : vector<16x128xf32>
    %216 = arith.truncf %215 : vector<16x128xf32> to vector<16x128xbf16>
    %217 = arith.index_cast %185 : i32 to index
    %c0_61 = arith.constant 0 : index
    %218 = vector.load %arg4[%217, %c0_61] : memref<128x128xbf16, #tpu.memory_space<vmem>>, vector<16x128xbf16>
    tpu.vector_store %arg4[%217, %c0_61], %216 {strides = array<i32>} : memref<128x128xbf16, #tpu.memory_space<vmem>>, vector<16x128xbf16>,
    %c6_i32 = arith.constant 6 : i32
    %c16_i32_62 = arith.constant 16 : i32
    %219 = arith.muli %c6_i32, %c16_i32_62 : i32
    %220 = tpu.assume_multiple %219, 16 : i32
    %221 = arith.index_cast %220 : i32 to index
    %c0_63 = arith.constant 0 : index
    %222 = vector.load %arg5[%221, %c0_63] : memref<128x512xf32, #tpu.memory_space<vmem>>, vector<16x512xf32>
    %c0_64 = arith.constant 0 : index
    %c0_65 = arith.constant 0 : index
    %223 = vector.load %arg3[%c0_64, %c0_65] : memref<128x512xbf16, #tpu.memory_space<vmem>>, vector<128x512xbf16>
    %cst_66 = arith.constant dense<0.000000e+00> : vector<16x512xf32>
    %224 = tpu.matmul %216, %223, %cst_66 {dimension_numbers = #tpu.dot_dimension_numbers<[1], [0], [0], [1], [0, 0, 1, 1], [], []>} : vector<16x128xbf16>, vector<128x512xbf16>, vector<16x512xf32> -> vector<16x512xf32>
    %225 = arith.addf %222, %224 : vector<16x512xf32>
    %226 = vector.extract_strided_slice %225 {offsets = [0, 0], sizes = [16, 128], strides = [1, 1]} : vector<16x512xf32> to vector<16x128xf32>
    %227 = arith.negf %226 : vector<16x128xf32>
    %228 = math.exp %227 : vector<16x128xf32>
    %cst_67 = arith.constant 1.000000e+00 : f32
    %229 = vector.broadcast %cst_67 : f32 to vector<16x128xf32>
    %230 = arith.addf %229, %228 : vector<16x128xf32>
    %231 = arith.divf %229, %230 : vector<16x128xf32>
    %232 = vector.extract_strided_slice %225 {offsets = [0, 128], sizes = [16, 128], strides = [1, 1]} : vector<16x512xf32> to vector<16x128xf32>
    %233 = arith.negf %232 : vector<16x128xf32>
    %234 = math.exp %233 : vector<16x128xf32>
    %cst_68 = arith.constant 1.000000e+00 : f32
    %235 = vector.broadcast %cst_68 : f32 to vector<16x128xf32>
    %236 = arith.addf %235, %234 : vector<16x128xf32>
    %237 = arith.divf %235, %236 : vector<16x128xf32>
    %238 = vector.extract_strided_slice %225 {offsets = [0, 256], sizes = [16, 128], strides = [1, 1]} : vector<16x512xf32> to vector<16x128xf32>
    %239 = math.tanh %238 : vector<16x128xf32>
    %240 = vector.extract_strided_slice %225 {offsets = [0, 384], sizes = [16, 128], strides = [1, 1]} : vector<16x512xf32> to vector<16x128xf32>
    %241 = arith.negf %240 : vector<16x128xf32>
    %242 = math.exp %241 : vector<16x128xf32>
    %cst_69 = arith.constant 1.000000e+00 : f32
    %243 = vector.broadcast %cst_69 : f32 to vector<16x128xf32>
    %244 = arith.addf %243, %242 : vector<16x128xf32>
    %245 = arith.divf %243, %244 : vector<16x128xf32>
    %246 = arith.mulf %237, %213 : vector<16x128xf32>
    %247 = arith.mulf %231, %239 : vector<16x128xf32>
    %248 = arith.addf %246, %247 : vector<16x128xf32>
    %249 = math.tanh %248 : vector<16x128xf32>
    %250 = arith.mulf %245, %249 : vector<16x128xf32>
    %251 = arith.truncf %250 : vector<16x128xf32> to vector<16x128xbf16>
    %252 = arith.index_cast %220 : i32 to index
    %c0_70 = arith.constant 0 : index
    %253 = vector.load %arg4[%252, %c0_70] : memref<128x128xbf16, #tpu.memory_space<vmem>>, vector<16x128xbf16>
    tpu.vector_store %arg4[%252, %c0_70], %251 {strides = array<i32>} : memref<128x128xbf16, #tpu.memory_space<vmem>>, vector<16x128xbf16>,
    %c7_i32 = arith.constant 7 : i32
    %c16_i32_71 = arith.constant 16 : i32
    %254 = arith.muli %c7_i32, %c16_i32_71 : i32
    %255 = tpu.assume_multiple %254, 16 : i32
    %256 = arith.index_cast %255 : i32 to index
    %c0_72 = arith.constant 0 : index
    %257 = vector.load %arg5[%256, %c0_72] : memref<128x512xf32, #tpu.memory_space<vmem>>, vector<16x512xf32>
    %c0_73 = arith.constant 0 : index
    %c0_74 = arith.constant 0 : index
    %258 = vector.load %arg3[%c0_73, %c0_74] : memref<128x512xbf16, #tpu.memory_space<vmem>>, vector<128x512xbf16>
    %cst_75 = arith.constant dense<0.000000e+00> : vector<16x512xf32>
    %259 = tpu.matmul %251, %258, %cst_75 {dimension_numbers = #tpu.dot_dimension_numbers<[1], [0], [0], [1], [0, 0, 1, 1], [], []>} : vector<16x128xbf16>, vector<128x512xbf16>, vector<16x512xf32> -> vector<16x512xf32>
    %260 = arith.addf %257, %259 : vector<16x512xf32>
    %261 = vector.extract_strided_slice %260 {offsets = [0, 0], sizes = [16, 128], strides = [1, 1]} : vector<16x512xf32> to vector<16x128xf32>
    %262 = arith.negf %261 : vector<16x128xf32>
    %263 = math.exp %262 : vector<16x128xf32>
    %cst_76 = arith.constant 1.000000e+00 : f32
    %264 = vector.broadcast %cst_76 : f32 to vector<16x128xf32>
    %265 = arith.addf %264, %263 : vector<16x128xf32>
    %266 = arith.divf %264, %265 : vector<16x128xf32>
    %267 = vector.extract_strided_slice %260 {offsets = [0, 128], sizes = [16, 128], strides = [1, 1]} : vector<16x512xf32> to vector<16x128xf32>
    %268 = arith.negf %267 : vector<16x128xf32>
    %269 = math.exp %268 : vector<16x128xf32>
    %cst_77 = arith.constant 1.000000e+00 : f32
    %270 = vector.broadcast %cst_77 : f32 to vector<16x128xf32>
    %271 = arith.addf %270, %269 : vector<16x128xf32>
    %272 = arith.divf %270, %271 : vector<16x128xf32>
    %273 = vector.extract_strided_slice %260 {offsets = [0, 256], sizes = [16, 128], strides = [1, 1]} : vector<16x512xf32> to vector<16x128xf32>
    %274 = math.tanh %273 : vector<16x128xf32>
    %275 = vector.extract_strided_slice %260 {offsets = [0, 384], sizes = [16, 128], strides = [1, 1]} : vector<16x512xf32> to vector<16x128xf32>
    %276 = arith.negf %275 : vector<16x128xf32>
    %277 = math.exp %276 : vector<16x128xf32>
    %cst_78 = arith.constant 1.000000e+00 : f32
    %278 = vector.broadcast %cst_78 : f32 to vector<16x128xf32>
    %279 = arith.addf %278, %277 : vector<16x128xf32>
    %280 = arith.divf %278, %279 : vector<16x128xf32>
    %281 = arith.mulf %272, %248 : vector<16x128xf32>
    %282 = arith.mulf %266, %274 : vector<16x128xf32>
    %283 = arith.addf %281, %282 : vector<16x128xf32>
    %284 = math.tanh %283 : vector<16x128xf32>
    %285 = arith.mulf %280, %284 : vector<16x128xf32>
    %286 = arith.truncf %285 : vector<16x128xf32> to vector<16x128xbf16>
    %287 = arith.index_cast %255 : i32 to index
    %c0_79 = arith.constant 0 : index
    %288 = vector.load %arg4[%287, %c0_79] : memref<128x128xbf16, #tpu.memory_space<vmem>>, vector<16x128xbf16>
    tpu.vector_store %arg4[%287, %c0_79], %286 {strides = array<i32>} : memref<128x128xbf16, #tpu.memory_space<vmem>>, vector<16x128xbf16>,
    %c8_i32 = arith.constant 8 : i32
    return
  }
}

</mosaic_0001>

<bundles_post_ra>
// kernel: tpu_custom_call.1
= control target key start
LH: loop header
LB: loop body
LE: loop exit
PB: predicated region body
PF: predicated region fallthrough
CT: control target
= control target key end

     0   :  { %9 = vsyncpa [#allocation4], 0  ;;  %s5035_s0 = inlined_call_operand.vmem [shape: bf16[128,32], index: 0, kind: input, shape index: {}]   ;;  %s5036_s1 = inlined_call_operand.vmem [shape: bf16[32,512], index: 1, kind: input, shape index: {}]   ;;  %s5037_s2 = inlined_call_operand.vmem [shape: f32[1,512], index: 2, kind: input, shape index: {}]   ;;  %s5038_s3 = inlined_call_operand.hbm [shape: bf16[128,512], index: 3, kind: input, shape index: {}]   ;;  %s5039_s4 = inlined_call_operand.hbm [shape: bf16[128,128], index: 4, kind: output, shape index: {}]  }
   0x1   :  { %10 = vsyncpa [#allocation5], 0  ;;  %s4224_s15 = smov [#allocation3]  }
   0x2   :  { %s22_s16 = sshll.u32 %s4224_s15, 4  ;;  %s23_s16 = int_to_ptr.vmem [resolvable:$true] %s22_s16 }
   0x3   :  { %s4188_s17 = scalar_lea.vmem %s23_s16, 4096  ;;  %p4193_p1 = scmp.lt.s32.totalorder %s23_s16, %s23_s16 }
   0x4   :  { %p4189_p0 = scmp.ne.s32.totalorder %s23_s16, %s4188_s17  ;;  %p4194_p2 = scmp.lt.s32.totalorder %s4188_s17, %s4188_s17 }
   0x6   :  { %p4195_p3 = por %p4194_p2, %p4193_p1 }
   0x8   :  { %p4196_p4 = pnand %p4195_p3, %p4189_p0 }
   0xa   :  { %4199 = shalt.err (!%p4196_p4)
}
   0xb   :  { %s4225_s18 = smov 256   ;;  %s4226_s19 = smov 16  }
   0xc   :  { %28 = dma.hbm_to_vmem [thread:$0]  %s5038_s3, 4096, %s23_s16, [#allocation4], %s4225_s18, %s4225_s18, %s4226_s19  }
   0xd   :  { %4220 = dma.done.wait [#allocation4], 4096  }
   0xe   :  { %4221 = vsyncadd [#allocation4], 4294963200  ;;  %v5040_v0 = vmov 0   ;;  %v3760_v1 = vld [vmem:[%s5036_s1 + $0x24] ss:$16 sps:$4 sm:$0xff]   ;;  %vm159_vm0 = vcmask 261120   ;;  %v59_v49 = vlaneseq }
   0xf   :  { %216 = vmatprep.mubr.bf16.mxu0 %v5040_v0  ;;  %329 = vmatprep.mubr.bf16.mxu1 %v5040_v0  ;;  %v3762_v2 = vld [vmem:[%s5036_s1 + $0x2c] ss:$16 sps:$4 sm:$0xff]   ;;  %v3764_v3 = vld [vmem:[%s5036_s1 + $0x20] ss:$16 sps:$4 sm:$0xff]   ;;  %v3765_v4 = vld [vmem:[%s5036_s1 + $0x28] ss:$16 sps:$4 sm:$0xff]  }
  0x10   :  { %196 = vmatprep.subr.bf16.mxu0 %v3760_v1  ;;  %309 = vmatprep.subr.bf16.mxu1 %v3762_v2  ;;  %v3766_v5 = vld [vmem:[%s5036_s1 + $0x4] ss:$16 sps:$4 sm:$0xff]   ;;  %v3768_v6 = vld [vmem:[%s5036_s1 + $0xc] ss:$16 sps:$4 sm:$0xff]   ;;  %v3770_v7 = vld [vmem:[%s5036_s1] ss:$16 sps:$4 sm:$0xff]  }
  0x11   :  { %197 = vmatpush1.bf16.msra.mxu0 %v3764_v3  ;;  %310 = vmatpush1.bf16.msra.mxu1 %v3765_v4  ;;  %v3771_v8 = vld [vmem:[%s5036_s1 + $0x8] ss:$16 sps:$4 sm:$0xff]   ;;  %v3772_v9 = vld [vmem:[%s5035_s0] sm:$0xff]   ;;  %v4307_v16 = vld [vmem:[#allocation3 + $0xec] ss:$16 sps:$4 sm:$0xff]   ;;  %v60_v50 = vshrl.u32 %v59_v49, 7 }
  0x12   :  { %198 = vmatprep.subr.bf16.mxu0 %v3766_v5  ;;  %311 = vmatprep.subr.bf16.mxu1 %v3768_v6  ;;  %v4288_v10 = vld [vmem:[#allocation3 + $0xe4] ss:$16 sps:$4 sm:$0xff]   ;;  %v4290_v11 = vld [vmem:[#allocation3 + $0xe0] ss:$16 sps:$4 sm:$0xff]   ;;  %v4305_v15 = vld [vmem:[#allocation3 + $0xe8] ss:$16 sps:$4 sm:$0xff]  }
  0x13   :  { %v4293_v12 = vld [vmem:[#allocation3 + $0xc4] ss:$16 sps:$4 sm:$0xff]   ;;  %v4297_v13 = vld [vmem:[#allocation3 + $0xc0] ss:$16 sps:$4 sm:$0xff]   ;;  %v3776_v17 = vld [vmem:[%s5035_s0 + $0x8] sm:$0xff]   ;;  %v61_v55 = vsub.s32 0, %v60_v50 }
  0x14   :  { %v4301_v14 = vld [vmem:[#allocation3 + $0xa4] ss:$16 sps:$4 sm:$0xff]   ;;  %v4312_v18 = vld [vmem:[#allocation3 + $0xa0] ss:$16 sps:$4 sm:$0xff]   ;;  %v4320_v20 = vld [vmem:[#allocation3 + $0xcc] ss:$16 sps:$4 sm:$0xff]  }
  0x15   :  { %199 = vmatpush1.bf16.msra.mxu0 %v3770_v7  ;;  %312 = vmatpush1.bf16.msra.mxu1 %v3771_v8  ;;  %v4317_v19 = vld [vmem:[#allocation3 + $0x84] ss:$16 sps:$4 sm:$0xff]   ;;  %v4322_v21 = vld [vmem:[#allocation3 + $0xc8] ss:$16 sps:$4 sm:$0xff]   ;;  %v4328_v22 = vld [vmem:[#allocation3 + $0x80] ss:$16 sps:$4 sm:$0xff]  }
  0x16   :  { %677 = vmatprep.subr.bf16.mxu0 %v4288_v10  ;;  %720 = vmatprep.subr.bf16.mxu1 %v4307_v16  ;;  %v4330_v23 = vld [vmem:[#allocation3 + $0xac] ss:$16 sps:$4 sm:$0xff]   ;;  %v4334_v24 = vld [vmem:[#allocation3 + $0x64] ss:$16 sps:$4 sm:$0xff]   ;;  %v4338_v25 = vld [vmem:[#allocation3 + $0xa8] ss:$16 sps:$4 sm:$0xff]  }
  0x17   :  { %v3780_v26 = vld [vmem:[%s5035_s0 + $0x10] sm:$0xff]   ;;  %v4347_v28 = vld [vmem:[#allocation3 + $0x8c] ss:$16 sps:$4 sm:$0xff]   ;;  %v4353_v30 = vld [vmem:[#allocation3 + $0x88] ss:$16 sps:$4 sm:$0xff]   ;;  %v69_v56 = vsub.s32 2, %v60_v50 }
  0x18   :  { %3361 = vmatmul.mubr.msk.bf16.vlgmr.msra.gmra.mxu0 %vm159_vm0, %v3772_v9  ;;  %3369 = vmatmul.mubr.msk.bf16.vlgmr.msra.gmra.mxu1 %vm159_vm0, %v3772_v9  ;;  %v4344_v27 = vld [vmem:[#allocation3 + $0x60] ss:$16 sps:$4 sm:$0xff]   ;;  %v4351_v29 = vld [vmem:[#allocation3 + $0x44] ss:$16 sps:$4 sm:$0xff]   ;;  %v4359_v31 = vld [vmem:[#allocation3 + $0x6c] ss:$16 sps:$4 sm:$0xff]  }
  0x19   :  { %678 = vmatpush1.bf16.msra.mxu0 %v4290_v11  ;;  %226 = vmatprep.mubr.bf16.mxu0 %v5040_v0  ;;  %v4362_v32 = vld [vmem:[#allocation3 + $0x40] ss:$16 sps:$4 sm:$0xff]   ;;  %v4365_v33 = vld [vmem:[#allocation3 + $0x24] ss:$16 sps:$4 sm:$0xff]   ;;  %v4369_v34 = vld [vmem:[#allocation3 + $0x68] ss:$16 sps:$4 sm:$0xff]  }
  0x1a   :  { %339 = vmatprep.mubr.bf16.mxu1 %v5040_v0  ;;  %679 = vmatprep.subr.bf16.mxu0 %v4293_v12  ;;  %v3787_v35 = vld [vmem:[%s5035_s0 + $0x18] sm:$0xff]   ;;  %v4375_v36 = vld [vmem:[#allocation3 + $0x20] ss:$16 sps:$4 sm:$0xff]   ;;  %v4384_v39 = vld [vmem:[#allocation3 + $0x4] ss:$16 sps:$4 sm:$0xff]   ;;  %v65_v60 = vsub.s32 1, %v60_v50 }
  0x1b   :  { %721 = vmatpush1.bf16.msra.mxu1 %v4305_v15  ;;  %v4378_v37 = vld [vmem:[#allocation3 + $0x4c] ss:$16 sps:$4 sm:$0xff]   ;;  %v4382_v38 = vld [vmem:[#allocation3 + $0x48] ss:$16 sps:$4 sm:$0xff]   ;;  %v4390_v41 = vld [vmem:[#allocation3] ss:$16 sps:$4 sm:$0xff]  }
  0x1c   :  { %722 = vmatprep.subr.bf16.mxu1 %v4320_v20  ;;  %v4386_v40 = vld [vmem:[#allocation3 + $0x2c] ss:$16 sps:$4 sm:$0xff]   ;;  %v4394_v42 = vld [vmem:[#allocation3 + $0x28] ss:$16 sps:$4 sm:$0xff]   ;;  %v3794_v43 = vld [vmem:[%s5035_s0 + $0x20] sm:$0xff]   ;;  %v73_v61 = vsub.s32 3, %v60_v50 }
  0x1d   :  { %680 = vmatpush1.bf16.msra.mxu0 %v4297_v13  ;;  %v4404_v44 = vld [vmem:[#allocation3 + $0xc] ss:$16 sps:$4 sm:$0xff]   ;;  %v4406_v45 = vld [vmem:[#allocation3 + $0x8] ss:$16 sps:$4 sm:$0xff]   ;;  %v3808_v47 = vld [vmem:[%s5035_s0 + $0x30] sm:$0xff]  }
  0x1e   :  { %681 = vmatprep.subr.bf16.mxu0 %v4301_v14  ;;  %v3801_v46 = vld [vmem:[%s5035_s0 + $0x28] sm:$0xff]   ;;  %v3818_v48 = vld [vmem:[%s5035_s0 + $0x38] sm:$0xff]   ;;  %v57_v57 = vld [vmem:[%s5037_s2] sm:$0xf]  ;;  %s4228_s2 = smov [#allocation6]  }
  0x1f   :  { %723 = vmatpush1.bf16.msra.mxu1 %v4322_v21  ;;  %v4494_v1 = vrot.slane %v57_v57, %v61_v55  ;;  %v4496_v2 = vrot.slane %v57_v57, %v69_v56  ;;  %v4498_v5 = vrot.slane %v57_v57, %v65_v60  ;;  %v4500_v6 = vrot.slane %v57_v57, %v73_v61  ;;  %s3326_s27 = sshll.u32 %s4228_s2, 4  ;;  %s3327_s27 = int_to_ptr.vmem [resolvable:$true] %s3326_s27 }
  0x20   :  { %3362 = vmatmul.mubr.msk.bf16.gmra.mxu0 %vm159_vm0, %v3776_v17  ;;  %3370 = vmatmul.mubr.msk.bf16.gmra.mxu1 %vm159_vm0, %v3776_v17  ;;  %s4200_s3 = scalar_lea.vmem %s3327_s27, 1024  ;;  %p4205_p6 = scmp.lt.s32.totalorder %s3327_s27, %s3327_s27 }
  0x21   :  { %236 = vmatprep.mubr.bf16.mxu0 %v5040_v0  ;;  %349 = vmatprep.mubr.bf16.mxu1 %v5040_v0  ;;  %p4201_p5 = scmp.ne.s32.totalorder %s3327_s27, %s4200_s3  ;;  %p4206_p7 = scmp.lt.s32.totalorder %s4200_s3, %s4200_s3 }
  0x22   :  { %682 = vmatpush1.bf16.msra.mxu0 %v4312_v18  ;;  %724 = vmatprep.subr.bf16.mxu1 %v4330_v23 }
  0x23   :  { %683 = vmatprep.subr.bf16.mxu0 %v4317_v19  ;;  %725 = vmatpush1.bf16.msra.mxu1 %v4338_v25  ;;  %p4207_p8 = por %p4206_p7, %p4205_p6 }
  0x24   :  { %726 = vmatprep.subr.bf16.mxu1 %v4347_v28 }
  0x25   :  { %p4208_p9 = pnand %p4207_p8, %p4201_p5 }
  0x26   :  { %684 = vmatpush1.bf16.msra.mxu0 %v4328_v22 }
  0x27   :  { %685 = vmatprep.subr.bf16.mxu0 %v4334_v24  ;;  %727 = vmatpush1.bf16.msra.mxu1 %v4353_v30 }
  0x28   :  { %3363 = vmatmul.mubr.msk.bf16.gmra.mxu0 %vm159_vm0, %v3780_v26  ;;  %3371 = vmatmul.mubr.msk.bf16.gmra.mxu1 %vm159_vm0, %v3780_v26 }
  0x29   :  { %246 = vmatprep.mubr.bf16.mxu0 %v5040_v0  ;;  %359 = vmatprep.mubr.bf16.mxu1 %v5040_v0 }
  0x2a   :  { %686 = vmatpush1.bf16.msra.mxu0 %v4344_v27  ;;  %728 = vmatprep.subr.bf16.mxu1 %v4359_v31 }
  0x2b   :  { %687 = vmatprep.subr.bf16.mxu0 %v4351_v29  ;;  %729 = vmatpush1.bf16.msra.mxu1 %v4369_v34 }
  0x2c   :  { %730 = vmatprep.subr.bf16.mxu1 %v4378_v37 }
  0x2e   :  { %688 = vmatpush1.bf16.msra.mxu0 %v4362_v32 }
  0x2f   :  { %689 = vmatprep.subr.bf16.mxu0 %v4365_v33  ;;  %731 = vmatpush1.bf16.msra.mxu1 %v4382_v38 }
  0x30   :  { %3364 = vmatmul.mubr.msk.bf16.gmra.mxu0 %vm159_vm0, %v3787_v35  ;;  %3372 = vmatmul.mubr.msk.bf16.gmra.mxu1 %vm159_vm0, %v3787_v35 }
  0x31   :  { %256 = vmatprep.mubr.bf16.mxu0 %v5040_v0  ;;  %369 = vmatprep.mubr.bf16.mxu1 %v5040_v0 }
  0x32   :  { %690 = vmatpush1.bf16.msra.mxu0 %v4375_v36  ;;  %732 = vmatprep.subr.bf16.mxu1 %v4386_v40 }
  0x33   :  { %691 = vmatprep.subr.bf16.mxu0 %v4384_v39  ;;  %733 = vmatpush1.bf16.msra.mxu1 %v4394_v42 }
  0x34   :  { %734 = vmatprep.subr.bf16.mxu1 %v4404_v44 }
  0x36   :  { %692 = vmatpush1.bf16.msra.mxu0 %v4390_v41 }
  0x37   :  { %1032 = vmatprep.subr.bf16.mxu0 %v4288_v10  ;;  %735 = vmatpush1.bf16.msra.mxu1 %v4406_v45 }
  0x38   :  { %3365 = vmatmul.mubr.msk.bf16.gmra.mxu0 %vm159_vm0, %v3794_v43  ;;  %3373 = vmatmul.mubr.msk.bf16.gmra.mxu1 %vm159_vm0, %v3794_v43 }
  0x39   :  { %266 = vmatprep.mubr.bf16.mxu0 %v5040_v0  ;;  %379 = vmatprep.mubr.bf16.mxu1 %v5040_v0 }
  0x3a   :  { %1075 = vmatprep.subr.bf16.mxu1 %v4307_v16 }
  0x40   :  { %3366 = vmatmul.mubr.msk.bf16.gmra.mxu0 %vm159_vm0, %v3801_v46  ;;  %3374 = vmatmul.mubr.msk.bf16.gmra.mxu1 %vm159_vm0, %v3801_v46 }
  0x41   :  { %276 = vmatprep.mubr.bf16.mxu0 %v5040_v0  ;;  %389 = vmatprep.mubr.bf16.mxu1 %v5040_v0 }
  0x48   :  { %3367 = vmatmul.mubr.msk.bf16.gmra.mxu0 %vm159_vm0, %v3808_v47  ;;  %3375 = vmatmul.mubr.msk.bf16.gmra.mxu1 %vm159_vm0, %v3808_v47 }
  0x49   :  { %286 = vmatprep.mubr.bf16.mxu0 %v5040_v0  ;;  %399 = vmatprep.mubr.bf16.mxu1 %v5040_v0 }
  0x50   :  { %3368 = vmatmul.mubr.msk.bf16.gmra.mxu0 %vm159_vm0, %v3818_v48  ;;  %3376 = vmatmul.mubr.msk.bf16.gmra.mxu1 %vm159_vm0, %v3818_v48 }
  0x51   :  { %709 = vmatprep.mubr.bf16.mxu0 %v5040_v0  ;;  %752 = vmatprep.mubr.bf16.mxu1 %v5040_v0 }
  0x58   :  { %710 = vmatmul.mubr.bf16.vlgmr.msra.gmra.mxu0 %v5040_v0  ;;  %753 = vmatmul.mubr.bf16.vlgmr.msra.gmra.mxu1 %v5040_v0 }
  0x59   :  { %1033 = vmatpush1.bf16.msra.mxu0 %v4290_v11  ;;  %1076 = vmatpush1.bf16.msra.mxu1 %v4305_v15 }
  0x5a   :  { %1034 = vmatprep.subr.bf16.mxu0 %v4293_v12  ;;  %1077 = vmatprep.subr.bf16.mxu1 %v4320_v20 }
  0x5b   :  { %1064 = vmatprep.mubr.bf16.mxu0 %v5040_v0  ;;  %1107 = vmatprep.mubr.bf16.mxu1 %v5040_v0 }
  0x5d   :  { %1035 = vmatpush1.bf16.msra.mxu0 %v4297_v13  ;;  %1078 = vmatpush1.bf16.msra.mxu1 %v4322_v21 }
  0x5e   :  { %1036 = vmatprep.subr.bf16.mxu0 %v4301_v14  ;;  %1079 = vmatprep.subr.bf16.mxu1 %v4330_v23 }
  0x61   :  { %1037 = vmatpush1.bf16.msra.mxu0 %v4312_v18  ;;  %1080 = vmatpush1.bf16.msra.mxu1 %v4338_v25 }
  0x62   :  { %1038 = vmatprep.subr.bf16.mxu0 %v4317_v19  ;;  %1081 = vmatprep.subr.bf16.mxu1 %v4347_v28 }
  0x65   :  { %1039 = vmatpush1.bf16.msra.mxu0 %v4328_v22  ;;  %1082 = vmatpush1.bf16.msra.mxu1 %v4353_v30 }
  0x66   :  { %1040 = vmatprep.subr.bf16.mxu0 %v4334_v24  ;;  %1083 = vmatprep.subr.bf16.mxu1 %v4359_v31 }
  0x69   :  { %1041 = vmatpush1.bf16.msra.mxu0 %v4344_v27  ;;  %1084 = vmatpush1.bf16.msra.mxu1 %v4369_v34 }
  0x6a   :  { %1042 = vmatprep.subr.bf16.mxu0 %v4351_v29  ;;  %1085 = vmatprep.subr.bf16.mxu1 %v4378_v37 }
  0x6d   :  { %1043 = vmatpush1.bf16.msra.mxu0 %v4362_v32  ;;  %1086 = vmatpush1.bf16.msra.mxu1 %v4382_v38 }
  0x6e   :  { %1044 = vmatprep.subr.bf16.mxu0 %v4365_v33  ;;  %1087 = vmatprep.subr.bf16.mxu1 %v4386_v40 }
  0x71   :  { %1045 = vmatpush1.bf16.msra.mxu0 %v4375_v36  ;;  %1088 = vmatpush1.bf16.msra.mxu1 %v4394_v42 }
  0x72   :  { %1046 = vmatprep.subr.bf16.mxu0 %v4384_v39  ;;  %1089 = vmatprep.subr.bf16.mxu1 %v4404_v44 }
  0x75   :  { %1047 = vmatpush1.bf16.msra.mxu0 %v4390_v41  ;;  %1090 = vmatpush1.bf16.msra.mxu1 %v4406_v45 }
  0x76   :  { %1388 = vmatprep.subr.bf16.mxu0 %v4288_v10  ;;  %1431 = vmatprep.subr.bf16.mxu1 %v4307_v16 }
  0xd8   :  { %v4475_v51 = vpop.f32.mrf.mxu0  ;;  %v4477_v52 = vpop.f32.mrf.mxu1 }
  0xda   :  { %v4479_v53 = vpop.f32.mrf.mxu0  ;;  %v4481_v54 = vpop.f32.mrf.mxu1 }
  0xdc   :  { %v4486_v58 = vpop.f32.mrf.mxu0  ;;  %v4488_v59 = vpop.f32.mrf.mxu1 }
  0xde   :  { %v4490_v62 = vpop.f32.mrf.mxu0  ;;  %v4492_v63 = vpop.f32.mrf.mxu1 }
  0xe0   :  { %v228_v3 = vpop.f32.mrf.mxu0  ;;  %v341_v4 = vpop.f32.mrf.mxu1 }
  0xe1   :  { %v4503_v7 = vadd.f32 %v228_v3, %v4494_v1  ;;  %v4506_v8 = vadd.f32 %v341_v4, %v4496_v2 }
  0xe2   :  { %v230_v9 = vpop.f32.mrf.mxu0  ;;  %v343_v10 = vpop.f32.mrf.mxu1 }
  0xe3   :  { %v4509_v16 = vadd.f32 %v230_v9, %v4498_v5  ;;  %v4512_v17 = vadd.f32 %v343_v10, %v4500_v6 }
  0xe4   :  { %v232_v26 = vpop.f32.mrf.mxu0  ;;  %v345_v35 = vpop.f32.mrf.mxu1 }
  0xe5   :  { %v4515_v43 = vadd.f32 %v232_v26, %v4494_v1  ;;  %v4518_v46 = vadd.f32 %v345_v35, %v4496_v2 }
  0xe6   :  { %v234_v47 = vpop.f32.mrf.mxu0  ;;  %v347_v48 = vpop.f32.mrf.mxu1 }
  0xe7   :  { %5042 = vst [vmem:[#allocation9_spill] sm:$0xff] %v4518_v46  ;;  %v4521_v49 = vadd.f32 %v234_v47, %v4498_v5  ;;  %v4524_v50 = vadd.f32 %v347_v48, %v4500_v6 }
  0xe8   :  { %v238_v55 = vpop.f32.mrf.mxu0  ;;  %v351_v56 = vpop.f32.mrf.mxu1 }
  0xe9   :  { %v4527_v57 = vadd.f32 %v238_v55, %v4494_v1  ;;  %v4530_v60 = vadd.f32 %v351_v56, %v4496_v2 }
  0xea   :  { %v240_v61 = vpop.f32.mrf.mxu0  ;;  %v353_v3 = vpop.f32.mrf.mxu1 }
  0xeb   :  { %5043 = vst [vmem:[#allocation10_spill] sm:$0xff] %v4527_v57  ;;  %5044 = vst [vmem:[#allocation11_spill] sm:$0xff] %v4530_v60  ;;  %v4533_v4 = vadd.f32 %v240_v61, %v4498_v5  ;;  %v4536_v9 = vadd.f32 %v353_v3, %v4500_v6 }
  0xec   :  { %v242_v10 = vpop.f32.mrf.mxu0  ;;  %v355_v26 = vpop.f32.mrf.mxu1 }
  0xed   :  { %5045 = vst [vmem:[#allocation12_spill] sm:$0xff] %v4533_v4  ;;  %5046 = vst [vmem:[#allocation13_spill] sm:$0xff] %v4536_v9  ;;  %v4539_v35 = vadd.f32 %v242_v10, %v4494_v1  ;;  %v4542_v47 = vadd.f32 %v355_v26, %v4496_v2 }
  0xee   :  { %v244_v48 = vpop.f32.mrf.mxu0  ;;  %v357_v55 = vpop.f32.mrf.mxu1 }
  0xef   :  { %5047 = vst [vmem:[#allocation14_spill] sm:$0xff] %v4539_v35  ;;  %5048 = vst [vmem:[#allocation15_spill] sm:$0xff] %v4542_v47  ;;  %v4545_v56 = vadd.f32 %v244_v48, %v4498_v5  ;;  %v4548_v0 = vadd.f32 %v357_v55, %v4500_v6 }
  0xf0   :  { %v248_v61 = vpop.f32.mrf.mxu0  ;;  %v361_v60 = vpop.f32.mrf.mxu1 }
  0xf1   :  { %5049 = vst [vmem:[#allocation16_spill] sm:$0xff] %v4545_v56  ;;  %5050 = vst [vmem:[#allocation17_spill] sm:$0xff] %v4548_v0  ;;  %v4551_v3 = vadd.f32 %v248_v61, %v4494_v1  ;;  %v4554_v9 = vadd.f32 %v361_v60, %v4496_v2 }
  0xf2   :  { %v250_v10 = vpop.f32.mrf.mxu0  ;;  %v363_v35 = vpop.f32.mrf.mxu1 }
  0xf3   :  { %5051 = vst [vmem:[#allocation18_spill] sm:$0xff] %v4551_v3  ;;  %5052 = vst [vmem:[#allocation19_spill] sm:$0xff] %v4554_v9  ;;  %v4557_v26 = vadd.f32 %v250_v10, %v4498_v5  ;;  %v4560_v47 = vadd.f32 %v363_v35, %v4500_v6 }
  0xf4   :  { %v252_v48 = vpop.f32.mrf.mxu0  ;;  %v365_v56 = vpop.f32.mrf.mxu1 }
  0xf5   :  { %5053 = vst [vmem:[#allocation20_spill] sm:$0xff] %v4557_v26  ;;  %5054 = vst [vmem:[#allocation21_spill] sm:$0xff] %v4560_v47  ;;  %v4563_v55 = vadd.f32 %v252_v48, %v4494_v1  ;;  %v4566_v0 = vadd.f32 %v365_v56, %v4496_v2 }
  0xf6   :  { %v254_v61 = vpop.f32.mrf.mxu0  ;;  %v367_v3 = vpop.f32.mrf.mxu1 }
  0xf7   :  { %5055 = vst [vmem:[#allocation22_spill] sm:$0xff] %v4563_v55  ;;  %5056 = vst [vmem:[#allocation23_spill] sm:$0xff] %v4566_v0  ;;  %v4569_v60 = vadd.f32 %v254_v61, %v4498_v5  ;;  %v4572_v9 = vadd.f32 %v367_v3, %v4500_v6 }
  0xf8   :  { %v258_v10 = vpop.f32.mrf.mxu0  ;;  %v371_v26 = vpop.f32.mrf.mxu1 }
  0xf9   :  { %5057 = vst [vmem:[#allocation24_spill] sm:$0xff] %v4569_v60  ;;  %5058 = vst [vmem:[#allocation25_spill] sm:$0xff] %v4572_v9  ;;  %v4575_v35 = vadd.f32 %v258_v10, %v4494_v1  ;;  %v4578_v47 = vadd.f32 %v371_v26, %v4496_v2 }
  0xfa   :  { %v260_v48 = vpop.f32.mrf.mxu0  ;;  %v373_v55 = vpop.f32.mrf.mxu1 }
  0xfb   :  { %5059 = vst [vmem:[#allocation26_spill] sm:$0xff] %v4575_v35  ;;  %5060 = vst [vmem:[#allocation27_spill] sm:$0xff] %v4578_v47  ;;  %v4581_v56 = vadd.f32 %v260_v48, %v4498_v5  ;;  %v4584_v0 = vadd.f32 %v373_v55, %v4500_v6 }
  0xfc   :  { %v262_v61 = vpop.f32.mrf.mxu0  ;;  %v375_v60 = vpop.f32.mrf.mxu1 }
  0xfd   :  { %5061 = vst [vmem:[#allocation28_spill] sm:$0xff] %v4581_v56  ;;  %5062 = vst [vmem:[#allocation29_spill] sm:$0xff] %v4584_v0  ;;  %v4587_v3 = vadd.f32 %v262_v61, %v4494_v1  ;;  %v4590_v9 = vadd.f32 %v375_v60, %v4496_v2 }
  0xfe   :  { %v264_v10 = vpop.f32.mrf.mxu0  ;;  %v377_v35 = vpop.f32.mrf.mxu1 }
  0xff   :  { %5063 = vst [vmem:[#allocation30_spill] sm:$0xff] %v4587_v3  ;;  %5064 = vst [vmem:[#allocation31_spill] sm:$0xff] %v4590_v9  ;;  %v4593_v26 = vadd.f32 %v264_v10, %v4498_v5  ;;  %v4596_v47 = vadd.f32 %v377_v35, %v4500_v6 }
 0x100   :  { %v268_v48 = vpop.f32.mrf.mxu0  ;;  %v381_v56 = vpop.f32.mrf.mxu1 }
 0x101   :  { %5065 = vst [vmem:[#allocation32_spill] sm:$0xff] %v4593_v26  ;;  %5066 = vst [vmem:[#allocation33_spill] sm:$0xff] %v4596_v47  ;;  %v4599_v55 = vadd.f32 %v268_v48, %v4494_v1  ;;  %v4602_v0 = vadd.f32 %v381_v56, %v4496_v2 }
 0x102   :  { %v270_v61 = vpop.f32.mrf.mxu0  ;;  %v383_v3 = vpop.f32.mrf.mxu1 }
 0x103   :  { %5067 = vst [vmem:[#allocation34_spill] sm:$0xff] %v4599_v55  ;;  %5068 = vst [vmem:[#allocation35_spill] sm:$0xff] %v4602_v0  ;;  %v4605_v60 = vadd.f32 %v270_v61, %v4498_v5  ;;  %v4608_v9 = vadd.f32 %v383_v3, %v4500_v6 }
 0x104   :  { %v272_v10 = vpop.f32.mrf.mxu0  ;;  %v385_v26 = vpop.f32.mrf.mxu1 }
 0x105   :  { %5069 = vst [vmem:[#allocation36_spill] sm:$0xff] %v4605_v60  ;;  %5070 = vst [vmem:[#allocation37_spill] sm:$0xff] %v4608_v9  ;;  %v4611_v35 = vadd.f32 %v272_v10, %v4494_v1  ;;  %v4614_v47 = vadd.f32 %v385_v26, %v4496_v2 }
 0x106   :  { %v274_v48 = vpop.f32.mrf.mxu0  ;;  %v387_v55 = vpop.f32.mrf.mxu1 }
 0x107   :  { %5071 = vst [vmem:[#allocation38_spill] sm:$0xff] %v4611_v35  ;;  %5072 = vst [vmem:[#allocation39_spill] sm:$0xff] %v4614_v47  ;;  %v4617_v56 = vadd.f32 %v274_v48, %v4498_v5  ;;  %v4620_v0 = vadd.f32 %v387_v55, %v4500_v6 }
 0x108   :  { %v278_v61 = vpop.f32.mrf.mxu0  ;;  %v391_v60 = vpop.f32.mrf.mxu1 }
 0x109   :  { %5073 = vst [vmem:[#allocation40_spill] sm:$0xff] %v4617_v56  ;;  %5074 = vst [vmem:[#allocation41_spill] sm:$0xff] %v4620_v0  ;;  %v4623_v3 = vadd.f32 %v278_v61, %v4494_v1  ;;  %v4626_v9 = vadd.f32 %v391_v60, %v4496_v2 }
 0x10a   :  { %v280_v10 = vpop.f32.mrf.mxu0  ;;  %v393_v35 = vpop.f32.mrf.mxu1 }
 0x10b   :  { %5075 = vst [vmem:[#allocation42_spill] sm:$0xff] %v4623_v3  ;;  %5076 = vst [vmem:[#allocation43_spill] sm:$0xff] %v4626_v9  ;;  %v4629_v26 = vadd.f32 %v280_v10, %v4498_v5  ;;  %v4632_v47 = vadd.f32 %v393_v35, %v4500_v6 }
 0x10c   :  { %v282_v48 = vpop.f32.mrf.mxu0  ;;  %v395_v56 = vpop.f32.mrf.mxu1 }
 0x10d   :  { %5077 = vst [vmem:[#allocation44_spill] sm:$0xff] %v4629_v26  ;;  %5078 = vst [vmem:[#allocation45_spill] sm:$0xff] %v4632_v47  ;;  %v4635_v55 = vadd.f32 %v282_v48, %v4494_v1  ;;  %v4638_v0 = vadd.f32 %v395_v56, %v4496_v2 }
 0x10e   :  { %v284_v61 = vpop.f32.mrf.mxu0  ;;  %v397_v3 = vpop.f32.mrf.mxu1 }
 0x10f   :  { %5079 = vst [vmem:[#allocation46_spill] sm:$0xff] %v4635_v55  ;;  %5080 = vst [vmem:[#allocation47_spill] sm:$0xff] %v4638_v0  ;;  %v4641_v60 = vadd.f32 %v284_v61, %v4498_v5  ;;  %v4644_v9 = vadd.f32 %v397_v3, %v4500_v6 }
 0x110   :  { %v288_v10 = vpop.f32.mrf.mxu0  ;;  %v401_v26 = vpop.f32.mrf.mxu1 }
 0x111   :  { %5081 = vst [vmem:[#allocation48_spill] sm:$0xff] %v4641_v60  ;;  %5082 = vst [vmem:[#allocation49_spill] sm:$0xff] %v4644_v9  ;;  %v4647_v35 = vadd.f32 %v288_v10, %v4494_v1  ;;  %v4650_v47 = vadd.f32 %v401_v26, %v4496_v2  ;;  %v219_v26 = vadd.f32 %v4475_v51, %v4494_v1 }
 0x112   :  { %v290_v48 = vpop.f32.mrf.mxu0  ;;  %v403_v55 = vpop.f32.mrf.mxu1  ;;  %v225_v51 = vadd.f32 %v4490_v62, %v4498_v5 }
 0x113   :  { %5083 = vst [vmem:[#allocation50_spill] sm:$0xff] %v4647_v35  ;;  %5084 = vst [vmem:[#allocation51_spill] sm:$0xff] %v4650_v47  ;;  %v4653_v56 = vadd.f32 %v290_v48, %v4498_v5  ;;  %v4656_v0 = vadd.f32 %v403_v55, %v4500_v6 }
 0x114   :  { %v292_v61 = vpop.f32.mrf.mxu0  ;;  %v405_v60 = vpop.f32.mrf.mxu1 }
 0x115   :  { %5085 = vst [vmem:[#allocation52_spill] sm:$0xff] %v4653_v56  ;;  %5086 = vst [vmem:[#allocation53_spill] sm:$0xff] %v4656_v0  ;;  %v4659_v3 = vadd.f32 %v292_v61, %v4494_v1  ;;  %v4662_v9 = vadd.f32 %v405_v60, %v4496_v2  ;;  %v221_v0 = vadd.f32 %v4479_v53, %v4498_v5 }
 0x116   :  { %v294_v10 = vpop.f32.mrf.mxu0  ;;  %v407_v35 = vpop.f32.mrf.mxu1  ;;  %v223_v60 = vadd.f32 %v4486_v58, %v4494_v1  ;;  %v334_v58 = vadd.f32 %v4481_v54, %v4500_v6  ;;  %v332_v1 = vadd.f32 %v4477_v52, %v4496_v2 }
 0x117   :  { %5087 = vst [vmem:[#allocation54_spill] sm:$0xff] %v4659_v3  ;;  %5088 = vst [vmem:[#allocation55_spill] sm:$0xff] %v4662_v9  ;;  %v4667_v47 = vadd.f32 %v294_v10, %v4498_v5  ;;  %v4670_v48 = vadd.f32 %v407_v35, %v4500_v6  ;;  %v338_v5 = vadd.f32 %v4492_v63, %v4500_v6 }
 0x118   :  { %v711_v55 = vpop.f32.mrf.mxu0  ;;  %v754_v3 = vpop.f32.mrf.mxu1 }
 0x119   :  { %5089 = vst [vmem:[#allocation56_spill] sm:$0xff] %v4667_v47  ;;  %5090 = vst [vmem:[#allocation57_spill] sm:$0xff] %v4670_v48  ;;  %v763_v61 = vadd.f32 %v711_v55, %v219_v26 }
 0x11a   :  { %v713_v56 = vpop.f32.mrf.mxu0  ;;  %v756_v35 = vpop.f32.mrf.mxu1 }
 0x11b   :  { %v3409_v9 = vmul.f32 -1.442695, %v763_v61  ;;  %v764_v4 = vadd.f32 %v713_v56, %v221_v0  ;;  %v766_v0 = vadd.f32 %v756_v35, %v334_v58 }
 0x11c   :  { %v715_v57 = vpop.f32.mrf.mxu0  ;;  %v758_v26 = vpop.f32.mrf.mxu1 }
 0x11d   :  { %3924 = vpow2.f32 %v3409_v9  ;;  %v3411_v10 = vmul.f32 -1.442695, %v764_v4  ;;  %v767_v48 = vadd.f32 %v715_v57, %v223_v60  ;;  %v765_v57 = vadd.f32 %v754_v3, %v332_v1 }
 0x11e   :  { %v717_v47 = vpop.f32.mrf.mxu0  ;;  %v760_v62 = vpop.f32.mrf.mxu1  ;;  %v336_v4 = vadd.f32 %v4488_v59, %v4496_v2  ;;  %v3413_v9 = vmul.f32 -1.442695, %v766_v0 }
 0x11f   :  { %3926 = vpow2.f32 %v3411_v10  ;;  %v3410_v46 = vmul.f32 -1.442695, %v767_v48  ;;  %v768_v53 = vadd.f32 %v717_v47, %v225_v51 }
 0x120   :  { %v769_v56 = vadd.f32 %v758_v26, %v336_v4 }
 0x121   :  { %3928 = vpow2.f32 %v3410_v46  ;;  %v3412_v55 = vmul.f32 -1.442695, %v768_v53  ;;  %v770_v46 = vadd.f32 %v760_v62, %v338_v5 }
 0x123   :  { %3930 = vpow2.f32 %v3412_v55  ;;  %v3414_v61 = vmul.f32 -1.442695, %v770_v46 }
 0x124   :  { %3932 = vtanh.f32 %v765_v57 }
 0x125   :  { %3934 = vpow2.f32 %v3413_v9 }
 0x12a   :  { %v3925_v47 = vpop.eup %3924 }
 0x12b   :  { %v777_v48 = vadd.f32 1.0, %v3925_v47 }
 0x12c   :  { %v3927_v54 = vpop.eup %3926 }
 0x12d   :  { %3936 = vrcp.f32 %v777_v48  ;;  %v789_v60 = vadd.f32 1.0, %v3927_v54 }
 0x12e   :  { %v3929_v52 = vpop.eup %3928  ;;  %3938 = vtanh.f32 %v769_v56 }
 0x12f   :  { %3940 = vrcp.f32 %v789_v60  ;;  %v778_v51 = vadd.f32 1.0, %v3929_v52  ;;  %v5091_v52 = vmov 0  }
 0x130   :  { %v3931_v63 = vpop.eup %3930  ;;  %3942 = vpow2.f32 %v3414_v61 }
 0x131   :  { %3944 = vrcp.f32 %v778_v51  ;;  %v790_v6 = vadd.f32 1.0, %v3931_v63  ;;  %v3933_v59 = vpop.eup %3932 }
 0x132   :  { %v3935_v2 = vpop.eup %3934 }
 0x133   :  { %3946 = vrcp.f32 %v790_v6  ;;  %v803_v0 = vadd.f32 1.0, %v3935_v2 }
 0x135   :  { %3948 = vrcp.f32 %v803_v0 }
 0x13a   :  { %v3937_v3 = vpop.eup %3936 }
 0x13b   :  { %v3939_v10 = vpop.eup %3938  ;;  %v811_v35 = vmul.f32 %v3937_v3, %v3933_v59 }
 0x13c   :  { %v3941_v53 = vpop.eup %3940 }
 0x13d   :  { %v3943_v26 = vpop.eup %3942  ;;  %v809_v55 = vmul.f32 0.0, %v3941_v53 }
 0x13e   :  { %v3945_v58 = vpop.eup %3944  ;;  %v804_v57 = vadd.f32 1.0, %v3943_v26 }
 0x13f   :  { %v4686_v1 = vadd.f32 %v811_v35, %v809_v55  ;;  %v812_v62 = vmul.f32 %v3945_v58, %v3939_v10 }
 0x140   :  { %v3947_v5 = vpop.eup %3946 }
 0x141   :  { %v810_v4 = vmul.f32 0.0, %v3947_v5  ;;  %3950 = vtanh.f32 %v4686_v1 }
 0x142   :  { %3952 = vrcp.f32 %v804_v57  ;;  %v3949_v46 = vpop.eup %3948 }
 0x143   :  { %v4689_v9 = vadd.f32 %v812_v62, %v810_v4  ;;  %v4742_v4 = vld [vmem:[#allocation3 + $0xe4] ss:$16 sps:$4 sm:$0xff]  }
 0x145   :  { %3954 = vtanh.f32 %v4689_v9 }
 0x14e   :  { %v3951_v47 = vpop.eup %3950 }
 0x14f   :  { %v3953_v56 = vpop.eup %3952  ;;  %v817_v54 = vmul.f32 %v3951_v47, %v3949_v46  ;;  %v4746_v46 = vld [vmem:[#allocation3 + $0xe0] ss:$16 sps:$4 sm:$0xff]   ;;  %v4748_v47 = vld [vmem:[#allocation3 + $0xe8] ss:$16 sps:$4 sm:$0xff]  }
 0x152   :  { %v3955_v48 = vpop.eup %3954 }
 0x153   :  { %v818_v61 = vmul.f32 %v3955_v48, %v3953_v56  ;;  %v4754_v56 = vld [vmem:[#allocation3 + $0xc4] ss:$16 sps:$4 sm:$0xff]   ;;  %v4756_v48 = vld [vmem:[#allocation3 + $0xcc] ss:$16 sps:$4 sm:$0xff]  }
 0x155   :  { %v819_v60 = vpack.c.bf16 %v818_v61, %v817_v54  ;;  %v4758_v54 = vld [vmem:[#allocation3 + $0xc0] ss:$16 sps:$4 sm:$0xff]   ;;  %v4760_v61 = vld [vmem:[#allocation3 + $0xc8] ss:$16 sps:$4 sm:$0xff]  }
 0x157   :  { %3717 = vst [vmem:[#allocation6] sm:$0xff] %v819_v60   ;;  %1065 = vmatmul.mubr.bf16.vlgmr.msra.gmra.mxu0 %v819_v60  ;;  %1108 = vmatmul.mubr.bf16.vlgmr.msra.gmra.mxu1 %v819_v60  ;;  %v4766_v60 = vld [vmem:[#allocation3 + $0xa4] ss:$16 sps:$4 sm:$0xff]  }
 0x158   :  { %1389 = vmatpush1.bf16.msra.mxu0 %v4290_v11  ;;  %1432 = vmatpush1.bf16.msra.mxu1 %v4305_v15 }
 0x159   :  { %1390 = vmatprep.subr.bf16.mxu0 %v4293_v12  ;;  %1433 = vmatprep.subr.bf16.mxu1 %v4320_v20 }
 0x15a   :  { %1420 = vmatprep.mubr.bf16.mxu0 %v5091_v52  ;;  %1463 = vmatprep.mubr.bf16.mxu1 %v5091_v52 }
 0x15c   :  { %1391 = vmatpush1.bf16.msra.mxu0 %v4297_v13  ;;  %1434 = vmatpush1.bf16.msra.mxu1 %v4322_v21 }
 0x15d   :  { %1392 = vmatprep.subr.bf16.mxu0 %v4301_v14  ;;  %1435 = vmatprep.subr.bf16.mxu1 %v4330_v23 }
 0x160   :  { %1393 = vmatpush1.bf16.msra.mxu0 %v4312_v18  ;;  %1436 = vmatpush1.bf16.msra.mxu1 %v4338_v25 }
 0x161   :  { %1394 = vmatprep.subr.bf16.mxu0 %v4317_v19  ;;  %1437 = vmatprep.subr.bf16.mxu1 %v4347_v28 }
 0x164   :  { %1395 = vmatpush1.bf16.msra.mxu0 %v4328_v22  ;;  %1438 = vmatpush1.bf16.msra.mxu1 %v4353_v30 }
 0x165   :  { %1396 = vmatprep.subr.bf16.mxu0 %v4334_v24  ;;  %1439 = vmatprep.subr.bf16.mxu1 %v4359_v31 }
 0x168   :  { %1397 = vmatpush1.bf16.msra.mxu0 %v4344_v27  ;;  %1440 = vmatpush1.bf16.msra.mxu1 %v4369_v34 }
 0x169   :  { %1398 = vmatprep.subr.bf16.mxu0 %v4351_v29  ;;  %1441 = vmatprep.subr.bf16.mxu1 %v4378_v37 }
 0x16c   :  { %1399 = vmatpush1.bf16.msra.mxu0 %v4362_v32  ;;  %1442 = vmatpush1.bf16.msra.mxu1 %v4382_v38 }
 0x16d   :  { %1400 = vmatprep.subr.bf16.mxu0 %v4365_v33  ;;  %1443 = vmatprep.subr.bf16.mxu1 %v4386_v40 }
 0x170   :  { %1401 = vmatpush1.bf16.msra.mxu0 %v4375_v36  ;;  %1444 = vmatpush1.bf16.msra.mxu1 %v4394_v42  ;;  %v5092_v36 = vld [vmem:[#allocation9_spill] sm:$0xff] }
 0x171   :  { %1402 = vmatprep.subr.bf16.mxu0 %v4384_v39  ;;  %1445 = vmatprep.subr.bf16.mxu1 %v4404_v44 }
 0x174   :  { %1403 = vmatpush1.bf16.msra.mxu0 %v4390_v41  ;;  %1446 = vmatpush1.bf16.msra.mxu1 %v4406_v45 }
 0x175   :  { %1744 = vmatprep.subr.bf16.mxu0 %v4742_v4 }
 0x217   :  { %v1066_v11 = vpop.f32.mrf.mxu0  ;;  %v1109_v13 = vpop.f32.mrf.mxu1 }
 0x218   :  { %v1118_v12 = vadd.f32 %v1066_v11, %v4503_v7  ;;  %v1120_v31 = vadd.f32 %v1109_v13, %v4506_v8  ;;  %v4768_v11 = vld [vmem:[#allocation3 + $0xac] ss:$16 sps:$4 sm:$0xff]   ;;  %v4772_v13 = vld [vmem:[#allocation3 + $0xa8] ss:$16 sps:$4 sm:$0xff]  }
 0x219   :  { %v1068_v14 = vpop.f32.mrf.mxu0  ;;  %v1111_v21 = vpop.f32.mrf.mxu1 }
 0x21a   :  { %v3449_v15 = vmul.f32 -1.442695, %v1118_v12  ;;  %v1119_v18 = vadd.f32 %v1068_v14, %v4509_v16  ;;  %v1121_v29 = vadd.f32 %v1111_v21, %v4512_v17  ;;  %v4770_v12 = vld [vmem:[#allocation3 + $0xa0] ss:$16 sps:$4 sm:$0xff]   ;;  %v4789_v21 = vld [vmem:[#allocation3 + $0x6c] ss:$16 sps:$4 sm:$0xff]  }
 0x21b   :  { %v1070_v19 = vpop.f32.mrf.mxu0  ;;  %v1113_v27 = vpop.f32.mrf.mxu1  ;;  %v4778_v14 = vld [vmem:[#allocation3 + $0x80] ss:$16 sps:$4 sm:$0xff]  }
 0x21c   :  { %3956 = vpow2.f32 %v3449_v15  ;;  %v3451_v20 = vmul.f32 -1.442695, %v1119_v18  ;;  %v1122_v22 = vadd.f32 %v1070_v19, %v4515_v43  ;;  %v3453_v32 = vmul.f32 -1.442695, %v1121_v29  ;;  %v4780_v15 = vld [vmem:[#allocation3 + $0x84] ss:$16 sps:$4 sm:$0xff]  }
 0x21d   :  { %v1072_v23 = vpop.f32.mrf.mxu0  ;;  %v1115_v30 = vpop.f32.mrf.mxu1  ;;  %v1124_v37 = vadd.f32 %v1113_v27, %v5092_v36  ;;  %v4782_v18 = vld [vmem:[#allocation3 + $0x88] ss:$16 sps:$4 sm:$0xff]   ;;  %v4784_v19 = vld [vmem:[#allocation3 + $0x8c] ss:$16 sps:$4 sm:$0xff]   ;;  %v4806_v27 = vld [vmem:[#allocation3 + $0x40] ss:$16 sps:$4 sm:$0xff]  }
 0x21e   :  { %3958 = vpow2.f32 %v3451_v20  ;;  %v3450_v24 = vmul.f32 -1.442695, %v1122_v22  ;;  %v1123_v25 = vadd.f32 %v1072_v23, %v4521_v49  ;;  %v1125_v33 = vadd.f32 %v1115_v30, %v4524_v50  ;;  %v4786_v20 = vld [vmem:[#allocation3 + $0x64] ss:$16 sps:$4 sm:$0xff]   ;;  %v4794_v22 = vld [vmem:[#allocation3 + $0x60] ss:$16 sps:$4 sm:$0xff]  }
 0x21f   :  { %v4796_v23 = vld [vmem:[#allocation3 + $0x68] ss:$16 sps:$4 sm:$0xff]   ;;  %v4812_v29 = vld [vmem:[#allocation3 + $0x24] ss:$16 sps:$4 sm:$0xff]   ;;  %v4814_v30 = vld [vmem:[#allocation3 + $0x2c] ss:$16 sps:$4 sm:$0xff]  }
 0x220   :  { %3960 = vpow2.f32 %v3450_v24  ;;  %v3452_v28 = vmul.f32 -1.442695, %v1123_v25  ;;  %v3454_v40 = vmul.f32 -1.442695, %v1125_v33  ;;  %v4800_v24 = vld [vmem:[#allocation3 + $0x44] ss:$16 sps:$4 sm:$0xff]  }
 0x221   :  { %v4802_v25 = vld [vmem:[#allocation3 + $0x4c] ss:$16 sps:$4 sm:$0xff]   ;;  %v4824_v33 = vld [vmem:[#allocation3 + $0x4] ss:$16 sps:$4 sm:$0xff]   ;;  %v4830_v36 = vld [vmem:[#allocation3] ss:$16 sps:$4 sm:$0xff]  }
 0x222   :  { %3962 = vpow2.f32 %v3452_v28  ;;  %v4808_v28 = vld [vmem:[#allocation3 + $0x48] ss:$16 sps:$4 sm:$0xff]  }
 0x223   :  { %3964 = vtanh.f32 %v1120_v31  ;;  %v4818_v31 = vld [vmem:[#allocation3 + $0x20] ss:$16 sps:$4 sm:$0xff]  }
 0x224   :  { %3966 = vpow2.f32 %v3453_v32  ;;  %v4820_v32 = vld [vmem:[#allocation3 + $0x28] ss:$16 sps:$4 sm:$0xff]  }
 0x229   :  { %v3957_v34 = vpop.eup %3956 }
 0x22a   :  { %v1132_v38 = vadd.f32 1.0, %v3957_v34  ;;  %v4826_v34 = vld [vmem:[#allocation3 + $0xc] ss:$16 sps:$4 sm:$0xff]  }
 0x22b   :  { %v3959_v39 = vpop.eup %3958 }
 0x22c   :  { %3968 = vrcp.f32 %v1132_v38  ;;  %v1144_v41 = vadd.f32 1.0, %v3959_v39  ;;  %v5093_v39 = vld [vmem:[#allocation10_spill] sm:$0xff] }
 0x22d   :  { %v3961_v42 = vpop.eup %3960  ;;  %3970 = vtanh.f32 %v1124_v37  ;;  %v4832_v37 = vld [vmem:[#allocation3 + $0x8] ss:$16 sps:$4 sm:$0xff]  }
 0x22e   :  { %3972 = vrcp.f32 %v1144_v41  ;;  %v1133_v44 = vadd.f32 1.0, %v3961_v42 }
 0x22f   :  { %v3963_v45 = vpop.eup %3962  ;;  %3974 = vpow2.f32 %v3454_v40 }
 0x230   :  { %3976 = vrcp.f32 %v1133_v44  ;;  %v1145_v7 = vadd.f32 1.0, %v3963_v45  ;;  %v3965_v8 = vpop.eup %3964  ;;  %v5094_v45 = vld [vmem:[#allocation12_spill] sm:$0xff] }
 0x231   :  { %v3967_v16 = vpop.eup %3966 }
 0x232   :  { %3978 = vrcp.f32 %v1145_v7  ;;  %v1158_v59 = vadd.f32 1.0, %v3967_v16 }
 0x234   :  { %3980 = vrcp.f32 %v1158_v59 }
 0x239   :  { %v3969_v17 = vpop.eup %3968 }
 0x23a   :  { %v3971_v43 = vpop.eup %3970  ;;  %v1166_v49 = vmul.f32 %v3969_v17, %v3965_v8 }
 0x23b   :  { %v3973_v50 = vpop.eup %3972 }
 0x23c   :  { %v3975_v51 = vpop.eup %3974  ;;  %v1164_v63 = vmul.f32 %v3973_v50, %v4686_v1 }
 0x23d   :  { %v3977_v6 = vpop.eup %3976  ;;  %v1159_v35 = vadd.f32 1.0, %v3975_v51 }
 0x23e   :  { %v4733_v2 = vadd.f32 %v1166_v49, %v1164_v63  ;;  %v1167_v3 = vmul.f32 %v3977_v6, %v3971_v43  ;;  %v5095_v43 = vld [vmem:[#allocation14_spill] sm:$0xff]  ;;  %v5096_v63 = vld [vmem:[#allocation16_spill] sm:$0xff] }
 0x23f   :  { %v3979_v10 = vpop.eup %3978 }
 0x240   :  { %v1165_v53 = vmul.f32 %v3979_v10, %v4689_v9  ;;  %3982 = vtanh.f32 %v4733_v2  ;;  %v4744_v9 = vld [vmem:[#allocation3 + $0xec] ss:$16 sps:$4 sm:$0xff]   ;;  %v5097_v10 = vld [vmem:[#allocation13_spill] sm:$0xff] }
 0x241   :  { %3984 = vrcp.f32 %v1159_v35  ;;  %v3981_v55 = vpop.eup %3980  ;;  %1787 = vmatprep.subr.bf16.mxu1 %v4744_v9 }
 0x242   :  { %v4736_v26 = vadd.f32 %v1167_v3, %v1165_v53 }
 0x244   :  { %3986 = vtanh.f32 %v4736_v26 }
 0x24d   :  { %v3983_v58 = vpop.eup %3982 }
 0x24e   :  { %v3985_v0 = vpop.eup %3984  ;;  %v1172_v62 = vmul.f32 %v3983_v58, %v3981_v55  ;;  %v5098_v55 = vld [vmem:[#allocation11_spill] sm:$0xff] }
 0x251   :  { %v3987_v1 = vpop.eup %3986 }
 0x252   :  { %v1173_v5 = vmul.f32 %v3987_v1, %v3985_v0  ;;  %v5099_v1 = vld [vmem:[#allocation17_spill] sm:$0xff] }
 0x254   :  { %v1174_v57 = vpack.c.bf16 %v1173_v5, %v1172_v62 }
 0x256   :  { %3722 = vst [vmem:[#allocation6 + $0x8] sm:$0xff] %v1174_v57   ;;  %1421 = vmatmul.mubr.bf16.vlgmr.msra.gmra.mxu0 %v1174_v57  ;;  %1464 = vmatmul.mubr.bf16.vlgmr.msra.gmra.mxu1 %v1174_v57  ;;  %v5100_v57 = vld [vmem:[#allocation15_spill] sm:$0xff] }
 0x257   :  { %1776 = vmatprep.mubr.bf16.mxu0 %v5091_v52  ;;  %1819 = vmatprep.mubr.bf16.mxu1 %v5091_v52 }
 0x258   :  { %1745 = vmatpush1.bf16.msra.mxu0 %v4746_v46  ;;  %1788 = vmatpush1.bf16.msra.mxu1 %v4748_v47 }
 0x259   :  { %1746 = vmatprep.subr.bf16.mxu0 %v4754_v56  ;;  %1789 = vmatprep.subr.bf16.mxu1 %v4756_v48 }
 0x25c   :  { %1747 = vmatpush1.bf16.msra.mxu0 %v4758_v54  ;;  %1790 = vmatpush1.bf16.msra.mxu1 %v4760_v61 }
 0x25d   :  { %1748 = vmatprep.subr.bf16.mxu0 %v4766_v60  ;;  %1791 = vmatprep.subr.bf16.mxu1 %v4768_v11 }
 0x260   :  { %1749 = vmatpush1.bf16.msra.mxu0 %v4770_v12  ;;  %1792 = vmatpush1.bf16.msra.mxu1 %v4772_v13 }
 0x261   :  { %1750 = vmatprep.subr.bf16.mxu0 %v4780_v15  ;;  %1793 = vmatprep.subr.bf16.mxu1 %v4784_v19 }
 0x264   :  { %1751 = vmatpush1.bf16.msra.mxu0 %v4778_v14  ;;  %1794 = vmatpush1.bf16.msra.mxu1 %v4782_v18 }
 0x265   :  { %1752 = vmatprep.subr.bf16.mxu0 %v4786_v20  ;;  %1795 = vmatprep.subr.bf16.mxu1 %v4789_v21 }
 0x268   :  { %1753 = vmatpush1.bf16.msra.mxu0 %v4794_v22  ;;  %1796 = vmatpush1.bf16.msra.mxu1 %v4796_v23 }
 0x269   :  { %1754 = vmatprep.subr.bf16.mxu0 %v4800_v24  ;;  %1797 = vmatprep.subr.bf16.mxu1 %v4802_v25 }
 0x26c   :  { %1755 = vmatpush1.bf16.msra.mxu0 %v4806_v27  ;;  %1798 = vmatpush1.bf16.msra.mxu1 %v4808_v28 }
 0x26d   :  { %1756 = vmatprep.subr.bf16.mxu0 %v4812_v29  ;;  %1799 = vmatprep.subr.bf16.mxu1 %v4814_v30 }
 0x270   :  { %1757 = vmatpush1.bf16.msra.mxu0 %v4818_v31  ;;  %1800 = vmatpush1.bf16.msra.mxu1 %v4820_v32 }
 0x271   :  { %1758 = vmatprep.subr.bf16.mxu0 %v4824_v33  ;;  %1801 = vmatprep.subr.bf16.mxu1 %v4826_v34 }
 0x274   :  { %1759 = vmatpush1.bf16.msra.mxu0 %v4830_v36  ;;  %1802 = vmatpush1.bf16.msra.mxu1 %v4832_v37 }
 0x275   :  { %2100 = vmatprep.subr.bf16.mxu0 %v4742_v4  ;;  %2143 = vmatprep.subr.bf16.mxu1 %v4744_v9 }
 0x316   :  { %v1422_v38 = vpop.f32.mrf.mxu0  ;;  %v1465_v41 = vpop.f32.mrf.mxu1 }
 0x317   :  { %v1474_v40 = vadd.f32 %v1422_v38, %v5093_v39  ;;  %v1476_v58 = vadd.f32 %v1465_v41, %v5098_v55 }
 0x318   :  { %v1424_v42 = vpop.f32.mrf.mxu0  ;;  %v1467_v17 = vpop.f32.mrf.mxu1 }
 0x319   :  { %v3489_v44 = vmul.f32 -1.442695, %v1474_v40  ;;  %v1475_v7 = vadd.f32 %v1424_v42, %v5094_v45  ;;  %v1477_v35 = vadd.f32 %v1467_v17, %v5097_v10 }
 0x31a   :  { %v1426_v8 = vpop.f32.mrf.mxu0  ;;  %v1469_v59 = vpop.f32.mrf.mxu1 }
 0x31b   :  { %3988 = vpow2.f32 %v3489_v44  ;;  %v3491_v16 = vmul.f32 -1.442695, %v1475_v7  ;;  %v1478_v49 = vadd.f32 %v1426_v8, %v5095_v43  ;;  %v3493_v0 = vmul.f32 -1.442695, %v1477_v35 }
 0x31c   :  { %v1428_v50 = vpop.f32.mrf.mxu0  ;;  %v1471_v53 = vpop.f32.mrf.mxu1  ;;  %v1480_v38 = vadd.f32 %v1469_v59, %v5100_v57 }
 0x31d   :  { %3990 = vpow2.f32 %v3491_v16  ;;  %v3490_v51 = vmul.f32 -1.442695, %v1478_v49  ;;  %v1479_v6 = vadd.f32 %v1428_v50, %v5096_v63  ;;  %v1481_v62 = vadd.f32 %v1471_v53, %v5099_v1 }
 0x31f   :  { %3992 = vpow2.f32 %v3490_v51  ;;  %v3492_v3 = vmul.f32 -1.442695, %v1479_v6  ;;  %v3494_v42 = vmul.f32 -1.442695, %v1481_v62 }
 0x321   :  { %3994 = vpow2.f32 %v3492_v3 }
 0x322   :  { %3996 = vtanh.f32 %v1476_v58 }
 0x323   :  { %3998 = vpow2.f32 %v3493_v0 }
 0x328   :  { %v3989_v5 = vpop.eup %3988 }
 0x329   :  { %v1488_v39 = vadd.f32 1.0, %v3989_v5 }
 0x32a   :  { %v3991_v40 = vpop.eup %3990 }
 0x32b   :  { %4000 = vrcp.f32 %v1488_v39  ;;  %v1500_v44 = vadd.f32 1.0, %v3991_v40  ;;  %v5101_v40 = vld [vmem:[#allocation18_spill] sm:$0xff] }
 0x32c   :  { %v3993_v45 = vpop.eup %3992  ;;  %4002 = vtanh.f32 %v1480_v38 }
 0x32d   :  { %4004 = vrcp.f32 %v1500_v44  ;;  %v1489_v7 = vadd.f32 1.0, %v3993_v45 }
 0x32e   :  { %v3995_v8 = vpop.eup %3994  ;;  %4006 = vpow2.f32 %v3494_v42 }
 0x32f   :  { %4008 = vrcp.f32 %v1489_v7  ;;  %v1501_v41 = vadd.f32 1.0, %v3995_v8  ;;  %v3997_v16 = vpop.eup %3996  ;;  %v5102_v8 = vld [vmem:[#allocation20_spill] sm:$0xff] }
 0x330   :  { %v3999_v17 = vpop.eup %3998 }
 0x331   :  { %4010 = vrcp.f32 %v1501_v41  ;;  %v1514_v3 = vadd.f32 1.0, %v3999_v17 }
 0x333   :  { %4012 = vrcp.f32 %v1514_v3 }
 0x338   :  { %v4001_v43 = vpop.eup %4000 }
 0x339   :  { %v4003_v49 = vpop.eup %4002  ;;  %v1522_v50 = vmul.f32 %v4001_v43, %v3997_v16 }
 0x33a   :  { %v4005_v51 = vpop.eup %4004 }
 0x33b   :  { %v4007_v63 = vpop.eup %4006  ;;  %v1520_v6 = vmul.f32 %v4005_v51, %v4733_v2 }
 0x33c   :  { %v4009_v59 = vpop.eup %4008  ;;  %v1515_v55 = vadd.f32 1.0, %v4007_v63 }
 0x33d   :  { %v4849_v10 = vadd.f32 %v1522_v50, %v1520_v6  ;;  %v1523_v35 = vmul.f32 %v4009_v59, %v4003_v49  ;;  %v5103_v49 = vld [vmem:[#allocation22_spill] sm:$0xff]  ;;  %v5104_v6 = vld [vmem:[#allocation24_spill] sm:$0xff] }
 0x33e   :  { %v4011_v53 = vpop.eup %4010 }
 0x33f   :  { %v1521_v58 = vmul.f32 %v4011_v53, %v4736_v26  ;;  %4014 = vtanh.f32 %v4849_v10  ;;  %v5105_v53 = vld [vmem:[#allocation21_spill] sm:$0xff] }
 0x340   :  { %4016 = vrcp.f32 %v1515_v55  ;;  %v4013_v1 = vpop.eup %4012 }
 0x341   :  { %v4852_v0 = vadd.f32 %v1523_v35, %v1521_v58 }
 0x343   :  { %4018 = vtanh.f32 %v4852_v0 }
 0x34c   :  { %v4015_v62 = vpop.eup %4014 }
 0x34d   :  { %v4017_v2 = vpop.eup %4016  ;;  %v1528_v57 = vmul.f32 %v4015_v62, %v4013_v1  ;;  %v5106_v1 = vld [vmem:[#allocation19_spill] sm:$0xff] }
 0x350   :  { %v4019_v5 = vpop.eup %4018 }
 0x351   :  { %v1529_v38 = vmul.f32 %v4019_v5, %v4017_v2  ;;  %v5107_v5 = vld [vmem:[#allocation25_spill] sm:$0xff] }
 0x353   :  { %v1530_v39 = vpack.c.bf16 %v1529_v38, %v1528_v57 }
 0x355   :  { %3727 = vst [vmem:[#allocation6 + $0x10] sm:$0xff] %v1530_v39   ;;  %1777 = vmatmul.mubr.bf16.vlgmr.msra.gmra.mxu0 %v1530_v39  ;;  %1820 = vmatmul.mubr.bf16.vlgmr.msra.gmra.mxu1 %v1530_v39  ;;  %v5108_v39 = vld [vmem:[#allocation23_spill] sm:$0xff] }
 0x356   :  { %2101 = vmatpush1.bf16.msra.mxu0 %v4746_v46  ;;  %2144 = vmatpush1.bf16.msra.mxu1 %v4748_v47 }
 0x357   :  { %2102 = vmatprep.subr.bf16.mxu0 %v4754_v56  ;;  %2145 = vmatprep.subr.bf16.mxu1 %v4756_v48 }
 0x358   :  { %2132 = vmatprep.mubr.bf16.mxu0 %v5091_v52  ;;  %2175 = vmatprep.mubr.bf16.mxu1 %v5091_v52 }
 0x35a   :  { %2103 = vmatpush1.bf16.msra.mxu0 %v4758_v54  ;;  %2146 = vmatpush1.bf16.msra.mxu1 %v4760_v61 }
 0x35b   :  { %2104 = vmatprep.subr.bf16.mxu0 %v4766_v60  ;;  %2147 = vmatprep.subr.bf16.mxu1 %v4768_v11 }
 0x35e   :  { %2105 = vmatpush1.bf16.msra.mxu0 %v4770_v12  ;;  %2148 = vmatpush1.bf16.msra.mxu1 %v4772_v13 }
 0x35f   :  { %2106 = vmatprep.subr.bf16.mxu0 %v4780_v15  ;;  %2149 = vmatprep.subr.bf16.mxu1 %v4784_v19 }
 0x362   :  { %2107 = vmatpush1.bf16.msra.mxu0 %v4778_v14  ;;  %2150 = vmatpush1.bf16.msra.mxu1 %v4782_v18 }
 0x363   :  { %2108 = vmatprep.subr.bf16.mxu0 %v4786_v20  ;;  %2151 = vmatprep.subr.bf16.mxu1 %v4789_v21 }
 0x366   :  { %2109 = vmatpush1.bf16.msra.mxu0 %v4794_v22  ;;  %2152 = vmatpush1.bf16.msra.mxu1 %v4796_v23 }
 0x367   :  { %2110 = vmatprep.subr.bf16.mxu0 %v4800_v24  ;;  %2153 = vmatprep.subr.bf16.mxu1 %v4802_v25 }
 0x36a   :  { %2111 = vmatpush1.bf16.msra.mxu0 %v4806_v27  ;;  %2154 = vmatpush1.bf16.msra.mxu1 %v4808_v28 }
 0x36b   :  { %2112 = vmatprep.subr.bf16.mxu0 %v4812_v29  ;;  %2155 = vmatprep.subr.bf16.mxu1 %v4814_v30 }
 0x36e   :  { %2113 = vmatpush1.bf16.msra.mxu0 %v4818_v31  ;;  %2156 = vmatpush1.bf16.msra.mxu1 %v4820_v32 }
 0x36f   :  { %2114 = vmatprep.subr.bf16.mxu0 %v4824_v33  ;;  %2157 = vmatprep.subr.bf16.mxu1 %v4826_v34 }
 0x372   :  { %2115 = vmatpush1.bf16.msra.mxu0 %v4830_v36  ;;  %2158 = vmatpush1.bf16.msra.mxu1 %v4832_v37 }
 0x373   :  { %2456 = vmatprep.subr.bf16.mxu0 %v4742_v4  ;;  %2499 = vmatprep.subr.bf16.mxu1 %v4744_v9 }
 0x415   :  { %v1778_v26 = vpop.f32.mrf.mxu0  ;;  %v1821_v44 = vpop.f32.mrf.mxu1 }
 0x416   :  { %v1830_v42 = vadd.f32 %v1778_v26, %v5101_v40  ;;  %v1832_v62 = vadd.f32 %v1821_v44, %v5106_v1 }
 0x417   :  { %v1780_v45 = vpop.f32.mrf.mxu0  ;;  %v1823_v43 = vpop.f32.mrf.mxu1 }
 0x418   :  { %v3529_v7 = vmul.f32 -1.442695, %v1830_v42  ;;  %v1831_v41 = vadd.f32 %v1780_v45, %v5102_v8  ;;  %v1833_v55 = vadd.f32 %v1823_v43, %v5105_v53 }
 0x419   :  { %v1782_v16 = vpop.f32.mrf.mxu0  ;;  %v1825_v3 = vpop.f32.mrf.mxu1 }
 0x41a   :  { %4020 = vpow2.f32 %v3529_v7  ;;  %v3531_v17 = vmul.f32 -1.442695, %v1831_v41  ;;  %v1834_v50 = vadd.f32 %v1782_v16, %v5103_v49  ;;  %v3533_v2 = vmul.f32 -1.442695, %v1833_v55 }
 0x41b   :  { %v1784_v51 = vpop.f32.mrf.mxu0  ;;  %v1827_v58 = vpop.f32.mrf.mxu1  ;;  %v1836_v26 = vadd.f32 %v1825_v3, %v5108_v39 }
 0x41c   :  { %4022 = vpow2.f32 %v3531_v17  ;;  %v3530_v63 = vmul.f32 -1.442695, %v1834_v50  ;;  %v1835_v59 = vadd.f32 %v1784_v51, %v5104_v6  ;;  %v1837_v57 = vadd.f32 %v1827_v58, %v5107_v5 }
 0x41e   :  { %4024 = vpow2.f32 %v3530_v63  ;;  %v3532_v35 = vmul.f32 -1.442695, %v1835_v59  ;;  %v3534_v45 = vmul.f32 -1.442695, %v1837_v57 }
 0x420   :  { %4026 = vpow2.f32 %v3532_v35 }
 0x421   :  { %4028 = vtanh.f32 %v1832_v62 }
 0x422   :  { %4030 = vpow2.f32 %v3533_v2 }
 0x427   :  { %v4021_v38 = vpop.eup %4020 }
 0x428   :  { %v1844_v40 = vadd.f32 1.0, %v4021_v38 }
 0x429   :  { %v4023_v42 = vpop.eup %4022 }
 0x42a   :  { %4032 = vrcp.f32 %v1844_v40  ;;  %v1856_v7 = vadd.f32 1.0, %v4023_v42  ;;  %v5109_v42 = vld [vmem:[#allocation26_spill] sm:$0xff] }
 0x42b   :  { %v4025_v8 = vpop.eup %4024  ;;  %4034 = vtanh.f32 %v1836_v26 }
 0x42c   :  { %4036 = vrcp.f32 %v1856_v7  ;;  %v1845_v41 = vadd.f32 1.0, %v4025_v8 }
 0x42d   :  { %v4027_v16 = vpop.eup %4026  ;;  %4038 = vpow2.f32 %v3534_v45 }
 0x42e   :  { %4040 = vrcp.f32 %v1845_v41  ;;  %v1857_v44 = vadd.f32 1.0, %v4027_v16  ;;  %v4029_v17 = vpop.eup %4028  ;;  %v5110_v16 = vld [vmem:[#allocation28_spill] sm:$0xff] }
 0x42f   :  { %v4031_v43 = vpop.eup %4030 }
 0x430   :  { %4042 = vrcp.f32 %v1857_v44  ;;  %v1870_v35 = vadd.f32 1.0, %v4031_v43 }
 0x432   :  { %4044 = vrcp.f32 %v1870_v35  ;;  %v5113_v35 = vld [vmem:[#allocation29_spill] sm:$0xff] }
 0x437   :  { %v4033_v49 = vpop.eup %4032 }
 0x438   :  { %v4035_v50 = vpop.eup %4034  ;;  %v1878_v51 = vmul.f32 %v4033_v49, %v4029_v17 }
 0x439   :  { %v4037_v63 = vpop.eup %4036 }
 0x43a   :  { %v4039_v6 = vpop.eup %4038  ;;  %v1876_v59 = vmul.f32 %v4037_v63, %v4849_v10 }
 0x43b   :  { %v4041_v3 = vpop.eup %4040  ;;  %v1871_v1 = vadd.f32 1.0, %v4039_v6 }
 0x43c   :  { %v4899_v53 = vadd.f32 %v1878_v51, %v1876_v59  ;;  %v1879_v55 = vmul.f32 %v4041_v3, %v4035_v50  ;;  %v5111_v50 = vld [vmem:[#allocation30_spill] sm:$0xff] }
 0x43d   :  { %v4043_v58 = vpop.eup %4042 }
 0x43e   :  { %v1877_v62 = vmul.f32 %v4043_v58, %v4852_v0  ;;  %4046 = vtanh.f32 %v4899_v53 }
 0x43f   :  { %4048 = vrcp.f32 %v1871_v1  ;;  %v4045_v5 = vpop.eup %4044  ;;  %v5114_v1 = vld [vmem:[#allocation27_spill] sm:$0xff] }
 0x440   :  { %v4902_v2 = vadd.f32 %v1879_v55, %v1877_v62 }
 0x442   :  { %4050 = vtanh.f32 %v4902_v2 }
 0x44b   :  { %v4047_v57 = vpop.eup %4046 }
 0x44c   :  { %v4049_v10 = vpop.eup %4048  ;;  %v1884_v39 = vmul.f32 %v4047_v57, %v4045_v5  ;;  %v5115_v57 = vld [vmem:[#allocation33_spill] sm:$0xff] }
 0x44f   :  { %v4051_v38 = vpop.eup %4050 }
 0x450   :  { %v1885_v26 = vmul.f32 %v4051_v38, %v4049_v10 }
 0x452   :  { %v1886_v40 = vpack.c.bf16 %v1885_v26, %v1884_v39  ;;  %v5116_v39 = vld [vmem:[#allocation31_spill] sm:$0xff] }
 0x454   :  { %3732 = vst [vmem:[#allocation6 + $0x18] sm:$0xff] %v1886_v40   ;;  %2133 = vmatmul.mubr.bf16.vlgmr.msra.gmra.mxu0 %v1886_v40  ;;  %2176 = vmatmul.mubr.bf16.vlgmr.msra.gmra.mxu1 %v1886_v40 }
 0x455   :  { %2457 = vmatpush1.bf16.msra.mxu0 %v4746_v46  ;;  %2500 = vmatpush1.bf16.msra.mxu1 %v4748_v47 }
 0x456   :  { %2458 = vmatprep.subr.bf16.mxu0 %v4754_v56  ;;  %2501 = vmatprep.subr.bf16.mxu1 %v4756_v48 }
 0x457   :  { %2488 = vmatprep.mubr.bf16.mxu0 %v5091_v52  ;;  %2531 = vmatprep.mubr.bf16.mxu1 %v5091_v52 }
 0x459   :  { %2459 = vmatpush1.bf16.msra.mxu0 %v4758_v54  ;;  %2502 = vmatpush1.bf16.msra.mxu1 %v4760_v61 }
 0x45a   :  { %2460 = vmatprep.subr.bf16.mxu0 %v4766_v60  ;;  %2503 = vmatprep.subr.bf16.mxu1 %v4768_v11 }
 0x45d   :  { %2461 = vmatpush1.bf16.msra.mxu0 %v4770_v12  ;;  %2504 = vmatpush1.bf16.msra.mxu1 %v4772_v13 }
 0x45e   :  { %2462 = vmatprep.subr.bf16.mxu0 %v4780_v15  ;;  %2505 = vmatprep.subr.bf16.mxu1 %v4784_v19 }
 0x461   :  { %2463 = vmatpush1.bf16.msra.mxu0 %v4778_v14  ;;  %2506 = vmatpush1.bf16.msra.mxu1 %v4782_v18 }
 0x462   :  { %2464 = vmatprep.subr.bf16.mxu0 %v4786_v20  ;;  %2507 = vmatprep.subr.bf16.mxu1 %v4789_v21 }
 0x465   :  { %2465 = vmatpush1.bf16.msra.mxu0 %v4794_v22  ;;  %2508 = vmatpush1.bf16.msra.mxu1 %v4796_v23 }
 0x466   :  { %2466 = vmatprep.subr.bf16.mxu0 %v4800_v24  ;;  %2509 = vmatprep.subr.bf16.mxu1 %v4802_v25 }
 0x469   :  { %2467 = vmatpush1.bf16.msra.mxu0 %v4806_v27  ;;  %2510 = vmatpush1.bf16.msra.mxu1 %v4808_v28 }
 0x46a   :  { %2468 = vmatprep.subr.bf16.mxu0 %v4812_v29  ;;  %2511 = vmatprep.subr.bf16.mxu1 %v4814_v30 }
 0x46d   :  { %2469 = vmatpush1.bf16.msra.mxu0 %v4818_v31  ;;  %2512 = vmatpush1.bf16.msra.mxu1 %v4820_v32 }
 0x46e   :  { %2470 = vmatprep.subr.bf16.mxu0 %v4824_v33  ;;  %2513 = vmatprep.subr.bf16.mxu1 %v4826_v34 }
 0x471   :  { %2471 = vmatpush1.bf16.msra.mxu0 %v4830_v36  ;;  %2514 = vmatpush1.bf16.msra.mxu1 %v4832_v37 }
 0x472   :  { %2812 = vmatprep.subr.bf16.mxu0 %v4742_v4  ;;  %2855 = vmatprep.subr.bf16.mxu1 %v4744_v9  ;;  %v5112_v4 = vld [vmem:[#allocation32_spill] sm:$0xff] }
 0x514   :  { %v2134_v0 = vpop.f32.mrf.mxu0  ;;  %v2177_v7 = vpop.f32.mrf.mxu1 }
 0x515   :  { %v2186_v45 = vadd.f32 %v2134_v0, %v5109_v42  ;;  %v2188_v62 = vadd.f32 %v2177_v7, %v5114_v1 }
 0x516   :  { %v2136_v8 = vpop.f32.mrf.mxu0  ;;  %v2179_v49 = vpop.f32.mrf.mxu1 }
 0x517   :  { %v3569_v41 = vmul.f32 -1.442695, %v2186_v45  ;;  %v2187_v44 = vadd.f32 %v2136_v8, %v5110_v16  ;;  %v2189_v55 = vadd.f32 %v2179_v49, %v5113_v35 }
 0x518   :  { %v2138_v17 = vpop.f32.mrf.mxu0  ;;  %v2181_v9 = vpop.f32.mrf.mxu1 }
 0x519   :  { %4052 = vpow2.f32 %v3569_v41  ;;  %v3571_v43 = vmul.f32 -1.442695, %v2187_v44  ;;  %v2190_v51 = vadd.f32 %v2138_v17, %v5111_v50  ;;  %v3573_v5 = vmul.f32 -1.442695, %v2189_v55 }
 0x51a   :  { %v2140_v63 = vpop.f32.mrf.mxu0  ;;  %v2183_v58 = vpop.f32.mrf.mxu1  ;;  %v2192_v26 = vadd.f32 %v2181_v9, %v5116_v39 }
 0x51b   :  { %4054 = vpow2.f32 %v3571_v43  ;;  %v3570_v6 = vmul.f32 -1.442695, %v2190_v51  ;;  %v2191_v59 = vadd.f32 %v2140_v63, %v5112_v4  ;;  %v2193_v10 = vadd.f32 %v2183_v58, %v5115_v57 }
 0x51d   :  { %4056 = vpow2.f32 %v3570_v6  ;;  %v3572_v3 = vmul.f32 -1.442695, %v2191_v59  ;;  %v3574_v42 = vmul.f32 -1.442695, %v2193_v10 }
 0x51f   :  { %4058 = vpow2.f32 %v3572_v3 }
 0x520   :  { %4060 = vtanh.f32 %v2188_v62 }
 0x521   :  { %4062 = vpow2.f32 %v3573_v5 }
 0x526   :  { %v4053_v38 = vpop.eup %4052 }
 0x527   :  { %v2200_v40 = vadd.f32 1.0, %v4053_v38 }
 0x528   :  { %v4055_v0 = vpop.eup %4054 }
 0x529   :  { %4064 = vrcp.f32 %v2200_v40  ;;  %v2212_v45 = vadd.f32 1.0, %v4055_v0 }
 0x52a   :  { %v4057_v8 = vpop.eup %4056  ;;  %4066 = vtanh.f32 %v2192_v26 }
 0x52b   :  { %4068 = vrcp.f32 %v2212_v45  ;;  %v2201_v41 = vadd.f32 1.0, %v4057_v8 }
 0x52c   :  { %v4059_v16 = vpop.eup %4058  ;;  %4070 = vpow2.f32 %v3574_v42 }
 0x52d   :  { %4072 = vrcp.f32 %v2201_v41  ;;  %v2213_v7 = vadd.f32 1.0, %v4059_v16  ;;  %v4061_v44 = vpop.eup %4060 }
 0x52e   :  { %v4063_v17 = vpop.eup %4062 }
 0x52f   :  { %4074 = vrcp.f32 %v2213_v7  ;;  %v2226_v59 = vadd.f32 1.0, %v4063_v17 }
 0x531   :  { %4076 = vrcp.f32 %v2226_v59 }
 0x536   :  { %v4065_v43 = vpop.eup %4064 }
 0x537   :  { %v4067_v49 = vpop.eup %4066  ;;  %v2234_v50 = vmul.f32 %v4065_v43, %v4061_v44 }
 0x538   :  { %v4069_v51 = vpop.eup %4068 }
 0x539   :  { %v4071_v63 = vpop.eup %4070  ;;  %v2232_v6 = vmul.f32 %v4069_v51, %v4899_v53 }
 0x53a   :  { %v4073_v4 = vpop.eup %4072  ;;  %v2227_v55 = vadd.f32 1.0, %v4071_v63 }
 0x53b   :  { %v4949_v9 = vadd.f32 %v2234_v50, %v2232_v6  ;;  %v2235_v3 = vmul.f32 %v4073_v4, %v4067_v49 }
 0x53c   :  { %v4075_v35 = vpop.eup %4074 }
 0x53d   :  { %v2233_v58 = vmul.f32 %v4075_v35, %v4902_v2  ;;  %4078 = vtanh.f32 %v4949_v9 }
 0x53e   :  { %4080 = vrcp.f32 %v2227_v55  ;;  %v4077_v62 = vpop.eup %4076 }
 0x53f   :  { %v4952_v1 = vadd.f32 %v2235_v3, %v2233_v58 }
 0x541   :  { %4082 = vtanh.f32 %v4952_v1 }
 0x54a   :  { %v4079_v5 = vpop.eup %4078 }
 0x54b   :  { %v4081_v53 = vpop.eup %4080  ;;  %v2240_v10 = vmul.f32 %v4079_v5, %v4077_v62 }
 0x54e   :  { %v4083_v57 = vpop.eup %4082 }
 0x54f   :  { %v2241_v38 = vmul.f32 %v4083_v57, %v4081_v53 }
 0x551   :  { %v2242_v39 = vpack.c.bf16 %v2241_v38, %v2240_v10 }
 0x553   :  { %3737 = vst [vmem:[#allocation6 + $0x20] sm:$0xff] %v2242_v39   ;;  %2489 = vmatmul.mubr.bf16.vlgmr.msra.gmra.mxu0 %v2242_v39  ;;  %2532 = vmatmul.mubr.bf16.vlgmr.msra.gmra.mxu1 %v2242_v39  ;;  %v3881_v39 = vld [vmem:[#allocation3 + $0xec] ss:$16 sps:$4 sm:$0xff]  }
 0x554   :  { %2813 = vmatpush1.bf16.msra.mxu0 %v4746_v46  ;;  %2856 = vmatpush1.bf16.msra.mxu1 %v4748_v47  ;;  %v5117_v47 = vld [vmem:[#allocation34_spill] sm:$0xff] }
 0x555   :  { %2814 = vmatprep.subr.bf16.mxu0 %v4754_v56  ;;  %2857 = vmatprep.subr.bf16.mxu1 %v4756_v48 }
 0x556   :  { %2844 = vmatprep.mubr.bf16.mxu0 %v5091_v52  ;;  %2887 = vmatprep.mubr.bf16.mxu1 %v5091_v52 }
 0x558   :  { %2815 = vmatpush1.bf16.msra.mxu0 %v4758_v54  ;;  %2858 = vmatpush1.bf16.msra.mxu1 %v4760_v61 }
 0x559   :  { %2816 = vmatprep.subr.bf16.mxu0 %v4766_v60  ;;  %2859 = vmatprep.subr.bf16.mxu1 %v4768_v11  ;;  %v5118_v60 = vld [vmem:[#allocation36_spill] sm:$0xff] }
 0x55c   :  { %2817 = vmatpush1.bf16.msra.mxu0 %v4770_v12  ;;  %2860 = vmatpush1.bf16.msra.mxu1 %v4772_v13 }
 0x55d   :  { %2818 = vmatprep.subr.bf16.mxu0 %v4780_v15  ;;  %2861 = vmatprep.subr.bf16.mxu1 %v4784_v19  ;;  %v5119_v15 = vld [vmem:[#allocation38_spill] sm:$0xff] }
 0x560   :  { %2819 = vmatpush1.bf16.msra.mxu0 %v4778_v14  ;;  %2862 = vmatpush1.bf16.msra.mxu1 %v4782_v18 }
 0x561   :  { %2820 = vmatprep.subr.bf16.mxu0 %v4786_v20  ;;  %2863 = vmatprep.subr.bf16.mxu1 %v4789_v21  ;;  %v5120_v21 = vld [vmem:[#allocation40_spill] sm:$0xff] }
 0x564   :  { %2821 = vmatpush1.bf16.msra.mxu0 %v4794_v22  ;;  %2864 = vmatpush1.bf16.msra.mxu1 %v4796_v23 }
 0x565   :  { %2822 = vmatprep.subr.bf16.mxu0 %v4800_v24  ;;  %2865 = vmatprep.subr.bf16.mxu1 %v4802_v25  ;;  %v5121_v25 = vld [vmem:[#allocation37_spill] sm:$0xff] }
 0x568   :  { %2823 = vmatpush1.bf16.msra.mxu0 %v4806_v27  ;;  %2866 = vmatpush1.bf16.msra.mxu1 %v4808_v28 }
 0x569   :  { %2824 = vmatprep.subr.bf16.mxu0 %v4812_v29  ;;  %2867 = vmatprep.subr.bf16.mxu1 %v4814_v30  ;;  %v5122_v29 = vld [vmem:[#allocation35_spill] sm:$0xff] }
 0x56c   :  { %2825 = vmatpush1.bf16.msra.mxu0 %v4818_v31  ;;  %2868 = vmatpush1.bf16.msra.mxu1 %v4820_v32  ;;  %v5123_v32 = vld [vmem:[#allocation41_spill] sm:$0xff] }
 0x56d   :  { %2826 = vmatprep.subr.bf16.mxu0 %v4824_v33  ;;  %2869 = vmatprep.subr.bf16.mxu1 %v4826_v34 }
 0x570   :  { %2827 = vmatpush1.bf16.msra.mxu0 %v4830_v36  ;;  %2870 = vmatpush1.bf16.msra.mxu1 %v4832_v37  ;;  %v5124_v36 = vld [vmem:[#allocation39_spill] sm:$0xff] }
 0x571   :  { %3211 = vmatprep.subr.bf16.mxu1 %v3881_v39 }
 0x613   :  { %v2490_v46 = vpop.f32.mrf.mxu0  ;;  %v2533_v48 = vpop.f32.mrf.mxu1 }
 0x614   :  { %v2542_v56 = vadd.f32 %v2490_v46, %v5117_v47  ;;  %v2544_v30 = vadd.f32 %v2533_v48, %v5122_v29  ;;  %v3876_v46 = vld [vmem:[#allocation3 + $0xe0] ss:$16 sps:$4 sm:$0xff]   ;;  %v3879_v47 = vld [vmem:[#allocation3 + $0xe8] ss:$16 sps:$4 sm:$0xff]   ;;  %v3887_v48 = vld [vmem:[#allocation3 + $0xcc] ss:$16 sps:$4 sm:$0xff]  }
 0x615   :  { %v2492_v54 = vpop.f32.mrf.mxu0  ;;  %v2535_v14 = vpop.f32.mrf.mxu1  ;;  %v3917_v29 = vld [vmem:[#allocation3 + $0x2c] ss:$16 sps:$4 sm:$0xff]  }
 0x616   :  { %v3609_v61 = vmul.f32 -1.442695, %v2542_v56  ;;  %v2543_v11 = vadd.f32 %v2492_v54, %v5118_v60  ;;  %v2545_v27 = vadd.f32 %v2535_v14, %v5121_v25  ;;  %v3884_v56 = vld [vmem:[#allocation3 + $0xc4] ss:$16 sps:$4 sm:$0xff]   ;;  %v3882_v54 = vld [vmem:[#allocation3 + $0xc0] ss:$16 sps:$4 sm:$0xff]  }
 0x617   :  { %v2494_v12 = vpop.f32.mrf.mxu0  ;;  %v2537_v23 = vpop.f32.mrf.mxu1  ;;  %v3890_v60 = vld [vmem:[#allocation3 + $0xa4] ss:$16 sps:$4 sm:$0xff]   ;;  %v3906_v25 = vld [vmem:[#allocation3 + $0x40] ss:$16 sps:$4 sm:$0xff]  }
 0x618   :  { %4084 = vpow2.f32 %v3609_v61  ;;  %v3611_v13 = vmul.f32 -1.442695, %v2543_v11  ;;  %v2546_v18 = vadd.f32 %v2494_v12, %v5119_v15  ;;  %v3613_v31 = vmul.f32 -1.442695, %v2545_v27  ;;  %v3885_v61 = vld [vmem:[#allocation3 + $0xc8] ss:$16 sps:$4 sm:$0xff]  }
 0x619   :  { %v2496_v19 = vpop.f32.mrf.mxu0  ;;  %v2539_v28 = vpop.f32.mrf.mxu1  ;;  %v2548_v37 = vadd.f32 %v2537_v23, %v5124_v36  ;;  %v3893_v11 = vld [vmem:[#allocation3 + $0xac] ss:$16 sps:$4 sm:$0xff]   ;;  %v3888_v12 = vld [vmem:[#allocation3 + $0xa0] ss:$16 sps:$4 sm:$0xff]   ;;  %v3896_v14 = vld [vmem:[#allocation3 + $0x84] ss:$16 sps:$4 sm:$0xff]  }
 0x61a   :  { %4086 = vpow2.f32 %v3611_v13  ;;  %v3610_v20 = vmul.f32 -1.442695, %v2546_v18  ;;  %v2547_v22 = vadd.f32 %v2496_v19, %v5120_v21  ;;  %v2549_v33 = vadd.f32 %v2539_v28, %v5123_v32  ;;  %v3894_v13 = vld [vmem:[#allocation3 + $0x80] ss:$16 sps:$4 sm:$0xff]   ;;  %v3897_v15 = vld [vmem:[#allocation3 + $0x88] ss:$16 sps:$4 sm:$0xff]  }
 0x61b   :  { %v3899_v18 = vld [vmem:[#allocation3 + $0x8c] ss:$16 sps:$4 sm:$0xff]   ;;  %v3902_v19 = vld [vmem:[#allocation3 + $0x64] ss:$16 sps:$4 sm:$0xff]   ;;  %v3900_v21 = vld [vmem:[#allocation3 + $0x60] ss:$16 sps:$4 sm:$0xff]  }
 0x61c   :  { %4088 = vpow2.f32 %v3610_v20  ;;  %v3612_v24 = vmul.f32 -1.442695, %v2547_v22  ;;  %v3614_v40 = vmul.f32 -1.442695, %v2549_v33  ;;  %v3905_v20 = vld [vmem:[#allocation3 + $0x6c] ss:$16 sps:$4 sm:$0xff]  }
 0x61d   :  { %v3903_v22 = vld [vmem:[#allocation3 + $0x68] ss:$16 sps:$4 sm:$0xff]   ;;  %v3908_v23 = vld [vmem:[#allocation3 + $0x44] ss:$16 sps:$4 sm:$0xff]   ;;  %v3923_v33 = vld [vmem:[#allocation3 + $0xc] ss:$16 sps:$4 sm:$0xff]  }
 0x61e   :  { %4090 = vpow2.f32 %v3612_v24  ;;  %v3911_v24 = vld [vmem:[#allocation3 + $0x4c] ss:$16 sps:$4 sm:$0xff]   ;;  %v3909_v27 = vld [vmem:[#allocation3 + $0x48] ss:$16 sps:$4 sm:$0xff]   ;;  %v3914_v28 = vld [vmem:[#allocation3 + $0x24] ss:$16 sps:$4 sm:$0xff]  }
 0x61f   :  { %4092 = vtanh.f32 %v2544_v30  ;;  %v3912_v30 = vld [vmem:[#allocation3 + $0x20] ss:$16 sps:$4 sm:$0xff]   ;;  %v3920_v32 = vld [vmem:[#allocation3 + $0x4] ss:$16 sps:$4 sm:$0xff]   ;;  %v3921_v36 = vld [vmem:[#allocation3 + $0x8] ss:$16 sps:$4 sm:$0xff]  }
 0x620   :  { %4094 = vpow2.f32 %v3613_v31  ;;  %v3915_v31 = vld [vmem:[#allocation3 + $0x28] ss:$16 sps:$4 sm:$0xff]  }
 0x625   :  { %v4085_v34 = vpop.eup %4084 }
 0x626   :  { %v2556_v2 = vadd.f32 1.0, %v4085_v34  ;;  %v3918_v34 = vld [vmem:[#allocation3] ss:$16 sps:$4 sm:$0xff]  }
 0x627   :  { %v4087_v26 = vpop.eup %4086 }
 0x628   :  { %4096 = vrcp.f32 %v2556_v2  ;;  %v2568_v0 = vadd.f32 1.0, %v4087_v26  ;;  %v5125_v2 = vld [vmem:[#allocation42_spill] sm:$0xff] }
 0x629   :  { %v4089_v42 = vpop.eup %4088  ;;  %4098 = vtanh.f32 %v2548_v37 }
 0x62a   :  { %4100 = vrcp.f32 %v2568_v0  ;;  %v2557_v45 = vadd.f32 1.0, %v4089_v42 }
 0x62b   :  { %v4091_v8 = vpop.eup %4090  ;;  %4102 = vpow2.f32 %v3614_v40 }
 0x62c   :  { %4104 = vrcp.f32 %v2557_v45  ;;  %v2569_v41 = vadd.f32 1.0, %v4091_v8  ;;  %v4093_v16 = vpop.eup %4092  ;;  %v5126_v45 = vld [vmem:[#allocation44_spill] sm:$0xff] }
 0x62d   :  { %v4095_v7 = vpop.eup %4094 }
 0x62e   :  { %4106 = vrcp.f32 %v2569_v41  ;;  %v2582_v6 = vadd.f32 1.0, %v4095_v7 }
 0x630   :  { %4108 = vrcp.f32 %v2582_v6 }
 0x635   :  { %v4097_v44 = vpop.eup %4096 }
 0x636   :  { %v4099_v17 = vpop.eup %4098  ;;  %v2590_v43 = vmul.f32 %v4097_v44, %v4093_v16  ;;  %v5127_v44 = vld [vmem:[#allocation46_spill] sm:$0xff] }
 0x637   :  { %v4101_v49 = vpop.eup %4100 }
 0x638   :  { %v4103_v50 = vpop.eup %4102  ;;  %v2588_v51 = vmul.f32 %v4101_v49, %v4949_v9 }
 0x639   :  { %v4105_v63 = vpop.eup %4104  ;;  %v2583_v35 = vadd.f32 1.0, %v4103_v50  ;;  %v5128_v50 = vld [vmem:[#allocation48_spill] sm:$0xff] }
 0x63a   :  { %v4997_v4 = vadd.f32 %v2590_v43, %v2588_v51  ;;  %v2591_v59 = vmul.f32 %v4105_v63, %v4099_v17 }
 0x63b   :  { %v4107_v3 = vpop.eup %4106 }
 0x63c   :  { %v2589_v55 = vmul.f32 %v4107_v3, %v4952_v1  ;;  %4110 = vtanh.f32 %v4997_v4  ;;  %v3878_v1 = vld [vmem:[#allocation3 + $0xe4] ss:$16 sps:$4 sm:$0xff]  }
 0x63d   :  { %4112 = vrcp.f32 %v2583_v35  ;;  %v4109_v62 = vpop.eup %4108  ;;  %3168 = vmatprep.subr.bf16.mxu0 %v3878_v1 }
 0x63e   :  { %v5000_v58 = vadd.f32 %v2591_v59, %v2589_v55  ;;  %v5129_v59 = vld [vmem:[#allocation45_spill] sm:$0xff]  ;;  %v5130_v55 = vld [vmem:[#allocation43_spill] sm:$0xff] }
 0x640   :  { %4114 = vtanh.f32 %v5000_v58 }
 0x649   :  { %v4111_v5 = vpop.eup %4110 }
 0x64a   :  { %v4113_v9 = vpop.eup %4112  ;;  %v2596_v57 = vmul.f32 %v4111_v5, %v4109_v62 }
 0x64d   :  { %v4115_v53 = vpop.eup %4114 }
 0x64e   :  { %v2597_v10 = vmul.f32 %v4115_v53, %v4113_v9  ;;  %v5131_v9 = vld [vmem:[#allocation49_spill] sm:$0xff] }
 0x650   :  { %v2598_v38 = vpack.c.bf16 %v2597_v10, %v2596_v57  ;;  %v5132_v10 = vld [vmem:[#allocation47_spill] sm:$0xff] }
 0x652   :  { %3742 = vst [vmem:[#allocation6 + $0x28] sm:$0xff] %v2598_v38   ;;  %2845 = vmatmul.mubr.bf16.vlgmr.msra.gmra.mxu0 %v2598_v38  ;;  %2888 = vmatmul.mubr.bf16.vlgmr.msra.gmra.mxu1 %v2598_v38 }
 0x653   :  { %3200 = vmatprep.mubr.bf16.mxu0 %v5091_v52  ;;  %3243 = vmatprep.mubr.bf16.mxu1 %v5091_v52  ;;  %v3891_v52 = vld [vmem:[#allocation3 + $0xa8] ss:$16 sps:$4 sm:$0xff]  }
 0x654   :  { %3169 = vmatpush1.bf16.msra.mxu0 %v3876_v46  ;;  %3212 = vmatpush1.bf16.msra.mxu1 %v3879_v47 }
 0x655   :  { %3170 = vmatprep.subr.bf16.mxu0 %v3884_v56  ;;  %3213 = vmatprep.subr.bf16.mxu1 %v3887_v48 }
 0x658   :  { %3171 = vmatpush1.bf16.msra.mxu0 %v3882_v54  ;;  %3214 = vmatpush1.bf16.msra.mxu1 %v3885_v61 }
 0x659   :  { %3172 = vmatprep.subr.bf16.mxu0 %v3890_v60  ;;  %3215 = vmatprep.subr.bf16.mxu1 %v3893_v11 }
 0x65c   :  { %3173 = vmatpush1.bf16.msra.mxu0 %v3888_v12  ;;  %3216 = vmatpush1.bf16.msra.mxu1 %v3891_v52 }
 0x65d   :  { %3174 = vmatprep.subr.bf16.mxu0 %v3896_v14  ;;  %3217 = vmatprep.subr.bf16.mxu1 %v3899_v18 }
 0x660   :  { %3175 = vmatpush1.bf16.msra.mxu0 %v3894_v13  ;;  %3218 = vmatpush1.bf16.msra.mxu1 %v3897_v15 }
 0x661   :  { %3176 = vmatprep.subr.bf16.mxu0 %v3902_v19  ;;  %3219 = vmatprep.subr.bf16.mxu1 %v3905_v20 }
 0x664   :  { %3177 = vmatpush1.bf16.msra.mxu0 %v3900_v21  ;;  %3220 = vmatpush1.bf16.msra.mxu1 %v3903_v22 }
 0x665   :  { %3178 = vmatprep.subr.bf16.mxu0 %v3908_v23  ;;  %3221 = vmatprep.subr.bf16.mxu1 %v3911_v24 }
 0x668   :  { %3179 = vmatpush1.bf16.msra.mxu0 %v3906_v25  ;;  %3222 = vmatpush1.bf16.msra.mxu1 %v3909_v27 }
 0x669   :  { %3180 = vmatprep.subr.bf16.mxu0 %v3914_v28  ;;  %3223 = vmatprep.subr.bf16.mxu1 %v3917_v29 }
 0x66c   :  { %3181 = vmatpush1.bf16.msra.mxu0 %v3912_v30  ;;  %3224 = vmatpush1.bf16.msra.mxu1 %v3915_v31 }
 0x66d   :  { %3182 = vmatprep.subr.bf16.mxu0 %v3920_v32  ;;  %3225 = vmatprep.subr.bf16.mxu1 %v3923_v33 }
 0x670   :  { %3183 = vmatpush1.bf16.msra.mxu0 %v3918_v34  ;;  %3226 = vmatpush1.bf16.msra.mxu1 %v3921_v36 }
 0x712   :  { %v2846_v37 = vpop.f32.mrf.mxu0  ;;  %v2889_v40 = vpop.f32.mrf.mxu1 }
 0x713   :  { %v2898_v26 = vadd.f32 %v2846_v37, %v5125_v2  ;;  %v2900_v62 = vadd.f32 %v2889_v40, %v5130_v55  ;;  %v5134_v40 = vld [vmem:[#allocation52_spill] sm:$0xff]  ;;  %v5139_v55 = vld [vmem:[#allocation57_spill] sm:$0xff] }
 0x714   :  { %v2848_v0 = vpop.f32.mrf.mxu0  ;;  %v2891_v7 = vpop.f32.mrf.mxu1 }
 0x715   :  { %v3649_v42 = vmul.f32 -1.442695, %v2898_v26  ;;  %v2899_v8 = vadd.f32 %v2848_v0, %v5126_v45  ;;  %v2901_v3 = vadd.f32 %v2891_v7, %v5129_v59  ;;  %v5138_v59 = vld [vmem:[#allocation51_spill] sm:$0xff] }
 0x716   :  { %v2850_v41 = vpop.f32.mrf.mxu0  ;;  %v2893_v63 = vpop.f32.mrf.mxu1 }
 0x717   :  { %4116 = vpow2.f32 %v3649_v42  ;;  %v3651_v16 = vmul.f32 -1.442695, %v2899_v8  ;;  %v2902_v17 = vadd.f32 %v2850_v41, %v5127_v44  ;;  %v3653_v5 = vmul.f32 -1.442695, %v2901_v3  ;;  %v5135_v41 = vld [vmem:[#allocation54_spill] sm:$0xff] }
 0x718   :  { %v2852_v43 = vpop.f32.mrf.mxu0  ;;  %v2895_v35 = vpop.f32.mrf.mxu1  ;;  %v2904_v38 = vadd.f32 %v2893_v63, %v5132_v10 }
 0x719   :  { %4118 = vpow2.f32 %v3651_v16  ;;  %v3650_v49 = vmul.f32 -1.442695, %v2902_v17  ;;  %v2903_v51 = vadd.f32 %v2852_v43, %v5128_v50  ;;  %v2905_v53 = vadd.f32 %v2895_v35, %v5131_v9  ;;  %v5136_v17 = vld [vmem:[#allocation56_spill] sm:$0xff]  ;;  %v5140_v9 = vld [vmem:[#allocation55_spill] sm:$0xff] }
 0x71b   :  { %4120 = vpow2.f32 %v3650_v49  ;;  %v3652_v6 = vmul.f32 -1.442695, %v2903_v51  ;;  %v3654_v46 = vmul.f32 -1.442695, %v2905_v53  ;;  %v5137_v51 = vld [vmem:[#allocation53_spill] sm:$0xff] }
 0x71d   :  { %4122 = vpow2.f32 %v3652_v6 }
 0x71e   :  { %4124 = vtanh.f32 %v2900_v62 }
 0x71f   :  { %4126 = vpow2.f32 %v3653_v5 }
 0x724   :  { %v4117_v57 = vpop.eup %4116 }
 0x725   :  { %v2912_v1 = vadd.f32 1.0, %v4117_v57 }
 0x726   :  { %v4119_v39 = vpop.eup %4118 }
 0x727   :  { %4128 = vrcp.f32 %v2912_v1  ;;  %v2924_v47 = vadd.f32 1.0, %v4119_v39 }
 0x728   :  { %v4121_v56 = vpop.eup %4120  ;;  %4130 = vtanh.f32 %v2904_v38 }
 0x729   :  { %4132 = vrcp.f32 %v2924_v47  ;;  %v2913_v48 = vadd.f32 1.0, %v4121_v56 }
 0x72a   :  { %v4123_v54 = vpop.eup %4122  ;;  %4134 = vpow2.f32 %v3654_v46 }
 0x72b   :  { %4136 = vrcp.f32 %v2913_v48  ;;  %v2925_v61 = vadd.f32 1.0, %v4123_v54  ;;  %v4125_v60 = vpop.eup %4124 }
 0x72c   :  { %v4127_v11 = vpop.eup %4126 }
 0x72d   :  { %4138 = vrcp.f32 %v2925_v61  ;;  %v2938_v20 = vadd.f32 1.0, %v4127_v11 }
 0x72f   :  { %4140 = vrcp.f32 %v2938_v20 }
 0x734   :  { %v4129_v12 = vpop.eup %4128 }
 0x735   :  { %v4131_v52 = vpop.eup %4130  ;;  %v2946_v13 = vmul.f32 %v4129_v12, %v4125_v60 }
 0x736   :  { %v4133_v14 = vpop.eup %4132 }
 0x737   :  { %v4135_v15 = vpop.eup %4134  ;;  %v2944_v18 = vmul.f32 %v4133_v14, %v4997_v4 }
 0x738   :  { %v4137_v19 = vpop.eup %4136  ;;  %v2939_v24 = vadd.f32 1.0, %v4135_v15 }
 0x739   :  { %v5015_v21 = vadd.f32 %v2946_v13, %v2944_v18  ;;  %v2947_v22 = vmul.f32 %v4137_v19, %v4131_v52 }
 0x73a   :  { %v4139_v23 = vpop.eup %4138 }
 0x73b   :  { %v2945_v25 = vmul.f32 %v4139_v23, %v5000_v58  ;;  %4142 = vtanh.f32 %v5015_v21  ;;  %v5133_v58 = vld [vmem:[#allocation50_spill] sm:$0xff] }
 0x73c   :  { %4144 = vrcp.f32 %v2939_v24  ;;  %v4141_v28 = vpop.eup %4140 }
 0x73d   :  { %v5018_v27 = vadd.f32 %v2947_v22, %v2945_v25 }
 0x73f   :  { %4146 = vtanh.f32 %v5018_v27 }
 0x748   :  { %v4143_v29 = vpop.eup %4142 }
 0x749   :  { %v4145_v4 = vpop.eup %4144  ;;  %v2952_v31 = vmul.f32 %v4143_v29, %v4141_v28 }
 0x74c   :  { %v4147_v30 = vpop.eup %4146 }
 0x74d   :  { %v2953_v32 = vmul.f32 %v4147_v30, %v4145_v4 }
 0x74f   :  { %v2954_v33 = vpack.c.bf16 %v2953_v32, %v2952_v31 }
 0x751   :  { %3747 = vst [vmem:[#allocation6 + $0x30] sm:$0xff] %v2954_v33   ;;  %3201 = vmatmul.mubr.bf16.vlgmr.msra.gmra.mxu0 %v2954_v33  ;;  %3244 = vmatmul.mubr.bf16.vlgmr.msra.gmra.mxu1 %v2954_v33 }
 0x811   :  { %v3202_v34 = vpop.f32.mrf.mxu0  ;;  %v3245_v37 = vpop.f32.mrf.mxu1 }
 0x812   :  { %v3254_v36 = vadd.f32 %v3202_v34, %v5133_v58  ;;  %v3256_v3 = vadd.f32 %v3245_v37, %v5138_v59 }
 0x813   :  { %v3204_v2 = vpop.f32.mrf.mxu0  ;;  %v3247_v8 = vpop.f32.mrf.mxu1 }
 0x814   :  { %v3689_v26 = vmul.f32 -1.442695, %v3254_v36  ;;  %v3255_v0 = vadd.f32 %v3204_v2, %v5134_v40  ;;  %v3257_v63 = vadd.f32 %v3247_v8, %v5137_v51 }
 0x815   :  { %v3206_v42 = vpop.f32.mrf.mxu0  ;;  %v3249_v49 = vpop.f32.mrf.mxu1 }
 0x816   :  { %4148 = vpow2.f32 %v3689_v26  ;;  %v3691_v45 = vmul.f32 -1.442695, %v3255_v0  ;;  %v3258_v16 = vadd.f32 %v3206_v42, %v5135_v41  ;;  %v3693_v35 = vmul.f32 -1.442695, %v3257_v63 }
 0x817   :  { %v3208_v7 = vpop.f32.mrf.mxu0  ;;  %v3251_v6 = vpop.f32.mrf.mxu1  ;;  %v3260_v53 = vadd.f32 %v3249_v49, %v5140_v9 }
 0x818   :  { %4150 = vpow2.f32 %v3691_v45  ;;  %v3690_v44 = vmul.f32 -1.442695, %v3258_v16  ;;  %v3259_v43 = vadd.f32 %v3208_v7, %v5136_v17  ;;  %v3261_v62 = vadd.f32 %v3251_v6, %v5139_v55 }
 0x81a   :  { %4152 = vpow2.f32 %v3690_v44  ;;  %v3692_v50 = vmul.f32 -1.442695, %v3259_v43  ;;  %v3694_v38 = vmul.f32 -1.442695, %v3261_v62 }
 0x81c   :  { %4154 = vpow2.f32 %v3692_v50 }
 0x81d   :  { %4156 = vtanh.f32 %v3256_v3 }
 0x81e   :  { %4158 = vpow2.f32 %v3693_v35 }
 0x823   :  { %v4149_v5 = vpop.eup %4148 }
 0x824   :  { %v3268_v57 = vadd.f32 1.0, %v4149_v5 }
 0x825   :  { %v4151_v10 = vpop.eup %4150 }
 0x826   :  { %4160 = vrcp.f32 %v3268_v57  ;;  %v3280_v1 = vadd.f32 1.0, %v4151_v10 }
 0x827   :  { %v4153_v39 = vpop.eup %4152  ;;  %4162 = vtanh.f32 %v3260_v53 }
 0x828   :  { %4164 = vrcp.f32 %v3280_v1  ;;  %v3269_v46 = vadd.f32 1.0, %v4153_v39 }
 0x829   :  { %v4155_v47 = vpop.eup %4154  ;;  %4166 = vpow2.f32 %v3694_v38 }
 0x82a   :  { %4168 = vrcp.f32 %v3269_v46  ;;  %v3281_v56 = vadd.f32 1.0, %v4155_v47  ;;  %v4157_v48 = vpop.eup %4156 }
 0x82b   :  { %v4159_v54 = vpop.eup %4158 }
 0x82c   :  { %4170 = vrcp.f32 %v3281_v56  ;;  %v3294_v52 = vadd.f32 1.0, %v4159_v54 }
 0x82e   :  { %4172 = vrcp.f32 %v3294_v52 }
 0x833   :  { %v4161_v61 = vpop.eup %4160 }
 0x834   :  { %v4163_v60 = vpop.eup %4162  ;;  %v3302_v11 = vmul.f32 %v4161_v61, %v4157_v48 }
 0x835   :  { %v4165_v12 = vpop.eup %4164 }
 0x836   :  { %v4167_v13 = vpop.eup %4166  ;;  %v3300_v14 = vmul.f32 %v4165_v12, %v5015_v21 }
 0x837   :  { %v4169_v15 = vpop.eup %4168  ;;  %v3295_v22 = vadd.f32 1.0, %v4167_v13 }
 0x838   :  { %v3304_v18 = vadd.f32 %v3302_v11, %v3300_v14  ;;  %v3303_v19 = vmul.f32 %v4169_v15, %v4163_v60 }
 0x839   :  { %v4171_v20 = vpop.eup %4170 }
 0x83a   :  { %4174 = vtanh.f32 %v3304_v18  ;;  %v3301_v23 = vmul.f32 %v4171_v20, %v5018_v27 }
 0x83b   :  { %4176 = vrcp.f32 %v3295_v22  ;;  %v4173_v25 = vpop.eup %4172 }
 0x83c   :  { %v3305_v24 = vadd.f32 %v3303_v19, %v3301_v23 }
 0x83e   :  { %4178 = vtanh.f32 %v3305_v24 }
 0x847   :  { %v4175_v28 = vpop.eup %4174 }
 0x848   :  { %v3308_v29 = vmul.f32 %v4175_v28, %v4173_v25  ;;  %v4177_v4 = vpop.eup %4176 }
 0x84b   :  { %v4179_v30 = vpop.eup %4178 }
 0x84c   :  { %v3309_v21 = vmul.f32 %v4179_v30, %v4177_v4 }
 0x84e   :  { %v3751_v31 = vpack.c.bf16 %v3309_v21, %v3308_v29 }
 0x850   :  { %3752 = vst [vmem:[#allocation6 + $0x38] sm:$0xff] %v3751_v31  }
 0x851   :  { %4211 = shalt.err (!%p4208_p9)
}
 0x852   :  { %s4229_s28 = smov 64   ;;  %s4230_s29 = smov 4  }
 0x853   :  { %3332 = dma.vmem_to_hbm [thread:$0]  %s3327_s27, 1024, %s5039_s4, [#allocation5], %s4229_s28, %s4229_s28, %s4230_s29  }
 0x854   :  { %4222 = dma.done.wait [#allocation5], 1024  }
 0x855   :  { %4223 = vsyncadd [#allocation5], 4294966272 }
 0x856   :  { %3336 = vsyncpa [#allocation4], 1 }
 0x857   :  { %3337 = vsyncpa [#allocation5], 1 }

</bundles_post_ra>
